<compile_context>
chip_gen: v7x
topology: tpu7x:2x2x1
jax: 0.10.0
libtpu: 0.0.40
codegen_flags: <defaults>
</compile_context>

<pallas_src>
import functools

import numpy as np
import jax
import jax.numpy as jnp
from jax.experimental import pallas as pl
from jax.experimental.pallas import tpu as pltpu


LANES = 128
_VMEM_LIMIT = 48 * 1024 * 1024      # <= v7x's 64 MiB physical; fine on v5e/v6e
_ACT_BUDGET = 24 * 1024 * 1024      # per-grid-step activation working set


def _round_up(x, m):
    return (x + m - 1) // m * m


def _recip(x):
    # Route the divide through the EUP (reciprocal slot); exact (non-approx).
    if hasattr(pl, "reciprocal"):
        return pl.reciprocal(x, approx=False)
    return 1.0 / x


def _roll_rows(x, shift):
    # Circular shift along the sublane (row) axis; rides the XLU slot.
    if hasattr(pltpu, "roll"):
        return pltpu.roll(x, shift, 0)
    return jnp.roll(x, shift, axis=0)


def _erf(x):
    # Abramowitz & Stegun 7.1.26, |err| < 1.5e-7 (f32-exact), built from
    # exp / reciprocal (EUP) + mul/add/where (VPU).
    a1, a2, a3, a4, a5 = (0.254829592, -0.284496736, 1.421413741,
                          -1.453152027, 1.061405429)
    p = 0.3275911
    ax = jnp.abs(x)
    t = _recip(1.0 + p * ax)
    poly = ((((a5 * t + a4) * t + a3) * t + a2) * t + a1) * t
    y = 1.0 - poly * jnp.exp(-ax * ax)
    return jnp.where(x < 0.0, -y, y)


def _gelu(x):
    # exact (erf-based) GELU, matching torch.nn.GELU() default numerics.
    return x * 0.5 * (1.0 + _erf(x * 0.7071067811865476))


# --------------------------------------------------------------------------
# Kernel 1: patch embed (stride==kernel Conv2d) as matmul + bias + GELU + BN.
# Batch folded into the M dimension; bf16 MXU operands; bf16 output to HBM.
# --------------------------------------------------------------------------

def _mm_gelu_bn_kernel(x_ref, w_ref, b_ref, scale_ref, shift_ref, o_ref):
    y = jnp.dot(x_ref[...], w_ref[...], preferred_element_type=jnp.float32)
    y = _gelu(y + b_ref[...])
    o_ref[...] = (y * scale_ref[...] + shift_ref[...]).astype(o_ref.dtype)


def mm_gelu_bn(x2d, w, b, scale, shift, *, out_dtype=jnp.bfloat16):
    M, K = x2d.shape
    D = w.shape[1]
    # Adaptive M tile: single tile when small, otherwise minimize padding
    # waste over a small candidate sweep.
    if M <= 512:
        tm = _round_up(M, 8)
    else:
        tm = min((128, 256, 512), key=lambda t: (_round_up(M, t), -t))
    Mp = _round_up(M, tm)
    if Mp != M:
        x2d = jnp.pad(x2d, ((0, Mp - M), (0, 0)))
    xb = x2d.astype(jnp.bfloat16)
    wb = w.astype(jnp.bfloat16)

    out = pl.pallas_call(
        _mm_gelu_bn_kernel,
        out_shape=jax.ShapeDtypeStruct((Mp, D), out_dtype),
        grid=(Mp // tm,),
        in_specs=[pl.BlockSpec((tm, K), lambda i: (i, 0)),
                  pl.BlockSpec((K, D), lambda i: (0, 0)),
                  pl.BlockSpec((1, D), lambda i: (0, 0)),
                  pl.BlockSpec((1, D), lambda i: (0, 0)),
                  pl.BlockSpec((1, D), lambda i: (0, 0))],
        out_specs=pl.BlockSpec((tm, D), lambda i: (i, 0)),
        compiler_params=pltpu.CompilerParams(
            dimension_semantics=("parallel",),
            vmem_limit_bytes=_VMEM_LIMIT),
        cost_estimate=pl.CostEstimate(
            flops=2 * Mp * K * D,
            transcendentals=Mp * D,
            bytes_accessed=Mp * K * 2 + K * D * 2 + Mp * D * 2 + 3 * D * 4),
    )(xb, wb, b, scale, shift)
    return out[:M]


# --------------------------------------------------------------------------
# Kernel 2: the FULL mixer stack (depth blocks) + fused 2x2 max-pool epilogue
# in one pallas_call.  Grid = (batch_tiles, depth); activation is VMEM-resident
# across the depth axis.  Flat (Bt*H*W, D) layout; depthwise taps via rolls.
# --------------------------------------------------------------------------

def _make_stack_kernel(Bt, H, W, D, ksize, depth):
    pad = ksize // 2
    kk = ksize * ksize
    HW = H * W
    Nt = Bt * HW
    Hp, Wp = H // 2, W // 2
    center = pad * ksize + pad

    def kernel(x_ref, masks_ref, dw_w_ref, pw_w_ref, vec_ref, o_ref, act_ref):
        l = pl.program_id(1)

        @pl.when(l == 0)
        def _():
            act_ref[...] = x_ref[...].astype(jnp.float32)   # bf16 -> f32 once

        x = act_ref[...]                                    # (Nt, D) f32
        dw_w = dw_w_ref[0]                                  # (kk, D) f32
        vec = vec_ref[0]                                    # (8, D)  f32

        # --- depthwise ksize x ksize 'same' conv: rolls + edge masks --------
        acc = x * dw_w[center:center + 1, :]                # center tap
        for ki in range(ksize):                             # unrolled taps
            for kj in range(ksize):
                di, dj = ki - pad, kj - pad
                if di == 0 and dj == 0:
                    continue
                s = di * W + dj
                k = ki * ksize + kj
                t = _roll_rows(x, (-s) % Nt)                # out[i] = x[i + s]
                acc = acc + (t * masks_ref[k]) * dw_w[k:k + 1, :]

        y = _gelu(acc + vec[0:1, :])                        # + dw bias, GELU
        y = y * vec[1:2, :] + vec[2:3, :]                   # dw BN affine
        y = y + x                                           # residual

        # --- pointwise 1x1 conv: (Nt, D) x (D, D) MXU matmul ----------------
        z = jnp.dot(y.astype(jnp.bfloat16), pw_w_ref[0],
                    preferred_element_type=jnp.float32)
        z = _gelu(z + vec[3:4, :])                          # + pw bias, GELU
        z = z * vec[4:5, :] + vec[5:6, :]                   # pw BN affine

        @pl.when(l < depth - 1)
        def _():
            act_ref[...] = z                                # carry in VMEM

        @pl.when(l == depth - 1)
        def _():
            # fused 2x2 max-pool epilogue (floor semantics == MaxPool2d)
            z4 = z.reshape(Bt * H, W, D)[:, :Wp * 2, :]
            z4 = jnp.max(z4.reshape(Bt * H * Wp, 2, D), axis=1)   # pool W
            z4 = z4.reshape(Bt, H, Wp, D)[:, :Hp * 2, :, :]
            z4 = jnp.max(z4.reshape(Bt * Hp, 2, Wp, D), axis=1)   # pool H
            o_ref[...] = z4.reshape(Bt, Hp * Wp, D).astype(o_ref.dtype)

    return kernel


def _choose_bt(B, HW, D):
    # Largest batch tile that (a) divides B, (b) keeps the flat tile sublane
    # dim 8-aligned unless it covers the whole batch, (c) fits a conservative
    # (v7x-safe) per-step VMEM activation budget; stop early once there are
    # >= 512 matmul rows (MXU well fed, step overhead amortized).
    per_img = HW * D * 40          # rough f32 working-set bytes per image
    valid = [c for c in range(1, B + 1)
             if B % c == 0 and (c == B or (c * HW) % 8 == 0)]
    bt = valid[0]
    for c in valid:
        if c * per_img > _ACT_BUDGET:
            break
        bt = c
        if c * HW >= 512:
            break
    return bt


def _tap_masks(Bt, H, W, ksize):
    # (kk, Bt*H*W, 1) f32: 1 where the tap's neighbor is inside the image.
    pad = ksize // 2
    kk = ksize * ksize
    N = Bt * H * W
    idx = np.arange(N)
    r = (idx // W) % H
    c = idx % W
    m = np.zeros((kk, N, 1), np.float32)
    for ki in range(ksize):
        for kj in range(ksize):
            di, dj = ki - pad, kj - pad
            ok = (r + di >= 0) & (r + di < H) & (c + dj >= 0) & (c + dj < W)
            m[ki * ksize + kj, :, 0] = ok.astype(np.float32)
    return jnp.asarray(m)


def mixer_stack(y_flat, stacked, masks, *, B, Bt, H, W, D, ksize, depth):
    HW = H * W
    Nt = Bt * HW
    nb = B // Bt
    Hp, Wp = H // 2, W // 2
    kk = ksize * ksize
    kernel = _make_stack_kernel(Bt, H, W, D, ksize, depth)

    return pl.pallas_call(
        kernel,
        out_shape=jax.ShapeDtypeStruct((B, Hp * Wp, D), jnp.float32),
        grid=(nb, depth),
        in_specs=[pl.BlockSpec((Nt, D), lambda b, l: (b, 0)),
                  pl.BlockSpec((kk, Nt, 1), lambda b, l: (0, 0, 0)),
                  pl.BlockSpec((1, kk, D), lambda b, l: (l, 0, 0)),
                  pl.BlockSpec((1, D, D), lambda b, l: (l, 0, 0)),
                  pl.BlockSpec((1, 8, D), lambda b, l: (l, 0, 0))],
        out_specs=pl.BlockSpec((Bt, Hp * Wp, D), lambda b, l: (b, 0, 0)),
        scratch_shapes=[pltpu.VMEM((Nt, D), jnp.float32)],
        compiler_params=pltpu.CompilerParams(
            dimension_semantics=("parallel", "arbitrary"),
            vmem_limit_bytes=_VMEM_LIMIT),
        cost_estimate=pl.CostEstimate(
            flops=B * depth * HW * D * (2 * kk + 2 * D),
            transcendentals=2 * B * depth * HW * D,
            bytes_accessed=(B * HW * D * 2 + B * Hp * Wp * D * 4
                            + nb * depth * (kk * D * 4 + 8 * D * 4 + D * D * 2)
                            + kk * Nt * 4)),
    )(y_flat, masks, stacked["dw_w"], stacked["pw_w"], stacked["vec"])


# ----------------------------- parameters -----------------------------------

def _bn_affine(key, dim, eps=1e-5):
    k1, k2, k3, k4 = jax.random.split(key, 4)
    gamma = 1.0 + 0.1 * jax.random.normal(k1, (dim,), jnp.float32)
    beta = 0.1 * jax.random.normal(k2, (dim,), jnp.float32)
    mean = 0.1 * jax.random.normal(k3, (dim,), jnp.float32)
    var = jax.random.uniform(k4, (dim,), jnp.float32, minval=0.5, maxval=1.5)
    scale = gamma / jnp.sqrt(var + eps)
    shift = beta - mean * scale
    return scale.reshape(1, dim), shift.reshape(1, dim)


def init_params(key, channels, dim, depth, sfa_width, kernel_size):
    keys = iter(jax.random.split(key, 3 + 6 * depth))
    K = sfa_width * sfa_width * channels
    p = {}
    p["w_first"] = 0.1 * jax.random.normal(next(keys), (K, dim), jnp.float32)
    p["b_first"] = 0.1 * jax.random.normal(next(keys), (1, dim), jnp.float32)
    p["scale_first"], p["shift_first"] = _bn_affine(next(keys), dim)
    blocks = []
    for _ in range(depth):
        blk = {}
        blk["dw_w"] = 0.1 * jax.random.normal(
            next(keys), (kernel_size * kernel_size, dim), jnp.float32)
        blk["dw_b"] = 0.1 * jax.random.normal(next(keys), (1, dim), jnp.float32)
        blk["dw_scale"], blk["dw_shift"] = _bn_affine(next(keys), dim)
        blk["pw_w"] = 0.1 * jax.random.normal(next(keys), (dim, dim), jnp.float32)
        blk["pw_b"] = 0.1 * jax.random.normal(next(keys), (1, dim), jnp.float32)
        blk["pw_scale"], blk["pw_shift"] = _bn_affine(next(keys), dim)
        blocks.append(blk)
    p["blocks"] = blocks
    return p


def _pad_axis(a, target, axis):
    padw = target - a.shape[axis]
    if padw <= 0:
        return a
    cfg = [(0, 0)] * a.ndim
    cfg[axis] = (0, padw)
    return jnp.pad(a, cfg)


def _prepare_params(params, Dp):
    # Zero-pad channel dims to a lane-dense multiple of 128 (padded channels
    # stay exactly 0 everywhere), stack per-block weights along a leading
    # depth axis, and pack the six (1, D) vectors per block into one (8, D).
    padc = lambda a: _pad_axis(a, Dp, a.ndim - 1)
    prep = {"w_first": padc(params["w_first"]),
            "b_first": padc(params["b_first"]),
            "scale_first": padc(params["scale_first"]),
            "shift_first": padc(params["shift_first"])}
    dw_w, pw_w, vec = [], [], []
    for blk in params["blocks"]:
        dw_w.append(padc(blk["dw_w"]))
        pw_w.append(_pad_axis(padc(blk["pw_w"]), Dp, 0).astype(jnp.bfloat16))
        vec.append(jnp.concatenate(
            [padc(blk["dw_b"]), padc(blk["dw_scale"]), padc(blk["dw_shift"]),
             padc(blk["pw_b"]), padc(blk["pw_scale"]), padc(blk["pw_shift"]),
             jnp.zeros((2, Dp), jnp.float32)], axis=0))
    prep["dw_w"] = jnp.stack(dw_w)          # (depth, kk, Dp)  f32
    prep["pw_w"] = jnp.stack(pw_w)          # (depth, Dp, Dp)  bf16
    prep["vec"] = jnp.stack(vec)            # (depth, 8, Dp)   f32
    return prep


# ----------------------------- forward pass ---------------------------------

def convmixer_maxpool_forward(x_nchw, params, *, sfa_width, kernel_size):
    depth = len(params["blocks"])
    assert depth >= 1
    # TODO(synk): depth==0 (no mixer blocks) would need a standalone max-pool
    # kernel; the fused-pool epilogue lives in the mixer-stack kernel.
    x = jnp.transpose(x_nchw, (0, 2, 3, 1)).astype(jnp.float32)   # NCHW -> NHWC
    B, H, W, C = x.shape
    sw = sfa_width
    Ho, Wo = H // sw, W // sw
    dim = params["b_first"].shape[-1]
    Dp = _round_up(dim, LANES)
    pp = _prepare_params(params, Dp)

    # first_conv (Conv2d stride==kernel) == patchify + matmul, batch folded
    # into the matmul M dimension; bf16 activation written to HBM.
    patches = (x[:, :Ho * sw, :Wo * sw, :]
               .reshape(B, Ho, sw, Wo, sw, C)
               .transpose(0, 1, 3, 2, 4, 5)
               .reshape(B * Ho * Wo, sw * sw * C))
    y = mm_gelu_bn(patches, pp["w_first"], pp["b_first"],
                   pp["scale_first"], pp["shift_first"])       # (B*Ho*Wo, Dp) bf16

    Bt = _choose_bt(B, Ho * Wo, Dp)
    masks = _tap_masks(Bt, Ho, Wo, kernel_size)
    out = mixer_stack(y, pp, masks, B=B, Bt=Bt, H=Ho, W=Wo, D=Dp,
                      ksize=kernel_size, depth=depth)          # (B, Hp*Wp, Dp) f32

    # (B, Hp*Wp, Dp) row-major == torch flatten(2,3).permute(0,2,1) ordering.
    return out[..., :dim]


# ----------------------------- main ------------------------------------------

if __name__ == "__main__":
    # Small shapes consistent with the module: channels=1, sfa_width=5, k=3.
    # dim=128 keeps every kernel lane-dense (other dims get zero-padded to 128).
    B, C, Himg, Wimg = 2, 1, 20, 20
    dim, depth, sfa_width, kernel_size = 128, 2, 5, 3

    kx, kp = jax.random.split(jax.random.PRNGKey(0))
    x = jax.random.normal(kx, (B, C, Himg, Wimg), jnp.float32)
    params = init_params(kp, C, dim, depth, sfa_width, kernel_size)

    fwd = jax.jit(functools.partial(convmixer_maxpool_forward,
                                    sfa_width=sfa_width,
                                    kernel_size=kernel_size))
    out = jax.block_until_ready(fwd(x, params))

    Ho, Wo = Himg // sfa_width, Wimg // sfa_width
    expected = (B, (Ho // 2) * (Wo // 2), dim)
    assert out.shape == expected, (out.shape, expected)
    assert bool(jnp.all(jnp.isfinite(out)))
    print("KERNEL_OK")
</pallas_src>

<mosaic_0001>
module attributes {stable_mosaic.version = 11 : i64} {
  func.func @_mm_gelu_bn_kernel(%arg0: i32, %arg1: memref<32x25xbf16, #tpu.memory_space<vmem>>, %arg2: memref<25x128xbf16, #tpu.memory_space<vmem>>, %arg3: memref<1x128xf32, #tpu.memory_space<vmem>>, %arg4: memref<1x128xf32, #tpu.memory_space<vmem>>, %arg5: memref<1x128xf32, #tpu.memory_space<vmem>>, %arg6: memref<32x128xbf16, #tpu.memory_space<vmem>>) attributes {dimension_semantics = [#tpu.dimension_semantics<parallel>], iteration_bounds = array<i64: 1>, scalar_prefetch = 0 : i64, scratch_operands = 0 : i64, tpu.core_type = #tpu.core_type<tc>, window_params = [{transform_indices = @transform_0, window_bounds = array<i64: 32, 25>}, {pipeline_mode = #tpu.pipeline_mode<synchronous>, transform_indices = @transform_1, window_bounds = array<i64: 25, 128>}, {pipeline_mode = #tpu.pipeline_mode<synchronous>, transform_indices = @transform_2, window_bounds = array<i64: 1, 128>}, {pipeline_mode = #tpu.pipeline_mode<synchronous>, transform_indices = @transform_3, window_bounds = array<i64: 1, 128>}, {pipeline_mode = #tpu.pipeline_mode<synchronous>, transform_indices = @transform_4, window_bounds = array<i64: 1, 128>}, {transform_indices = @transform_5, window_bounds = array<i64: 32, 128>}]} {
    %c0 = arith.constant 0 : index
    %c0_0 = arith.constant 0 : index
    %0 = vector.load %arg1[%c0, %c0_0] : memref<32x25xbf16, #tpu.memory_space<vmem>>, vector<32x25xbf16>
    %c0_1 = arith.constant 0 : index
    %c0_2 = arith.constant 0 : index
    %1 = vector.load %arg2[%c0_1, %c0_2] : memref<25x128xbf16, #tpu.memory_space<vmem>>, vector<25x128xbf16>
    %cst = arith.constant dense<0.000000e+00> : vector<32x128xf32>
    %2 = tpu.matmul %0, %1, %cst {dimension_numbers = #tpu.dot_dimension_numbers<[1], [0], [0], [1], [0, 0, 1, 1], [], []>} : vector<32x25xbf16>, vector<25x128xbf16>, vector<32x128xf32> -> vector<32x128xf32>
    %c0_3 = arith.constant 0 : index
    %c0_4 = arith.constant 0 : index
    %3 = vector.load %arg3[%c0_3, %c0_4] : memref<1x128xf32, #tpu.memory_space<vmem>>, vector<1x128xf32>
    %4 = vector.broadcast %3 : vector<1x128xf32> to vector<32x128xf32>
    %5 = arith.addf %2, %4 : vector<32x128xf32>
    %cst_5 = arith.constant 5.000000e-01 : f32
    %6 = vector.broadcast %cst_5 : f32 to vector<32x128xf32>
    %7 = arith.mulf %5, %6 : vector<32x128xf32>
    %cst_6 = arith.constant 0.707106769 : f32
    %8 = vector.broadcast %cst_6 : f32 to vector<32x128xf32>
    %9 = arith.mulf %5, %8 : vector<32x128xf32>
    %10 = math.absf %9 : vector<32x128xf32>
    %cst_7 = arith.constant 0.327591091 : f32
    %11 = vector.broadcast %cst_7 : f32 to vector<32x128xf32>
    %12 = arith.mulf %11, %10 : vector<32x128xf32>
    %cst_8 = arith.constant 1.000000e+00 : f32
    %13 = vector.broadcast %cst_8 : f32 to vector<32x128xf32>
    %14 = arith.addf %13, %12 : vector<32x128xf32>
    %15 = tpu.reciprocal %14 : vector<32x128xf32> -> vector<32x128xf32>
    %cst_9 = arith.constant 1.06140542 : f32
    %16 = vector.broadcast %cst_9 : f32 to vector<32x128xf32>
    %17 = arith.mulf %16, %15 : vector<32x128xf32>
    %cst_10 = arith.constant -1.45315206 : f32
    %18 = vector.broadcast %cst_10 : f32 to vector<32x128xf32>
    %19 = arith.addf %17, %18 : vector<32x128xf32>
    %20 = arith.mulf %19, %15 : vector<32x128xf32>
    %cst_11 = arith.constant 1.42141378 : f32
    %21 = vector.broadcast %cst_11 : f32 to vector<32x128xf32>
    %22 = arith.addf %20, %21 : vector<32x128xf32>
    %23 = arith.mulf %22, %15 : vector<32x128xf32>
    %cst_12 = arith.constant -0.284496725 : f32
    %24 = vector.broadcast %cst_12 : f32 to vector<32x128xf32>
    %25 = arith.addf %23, %24 : vector<32x128xf32>
    %26 = arith.mulf %25, %15 : vector<32x128xf32>
    %cst_13 = arith.constant 0.254829586 : f32
    %27 = vector.broadcast %cst_13 : f32 to vector<32x128xf32>
    %28 = arith.addf %26, %27 : vector<32x128xf32>
    %29 = arith.mulf %28, %15 : vector<32x128xf32>
    %cst_14 = arith.constant 0.000000e+00 : f32
    %30 = vector.broadcast %cst_14 : f32 to vector<32x128xf32>
    %31 = arith.subf %30, %10 : vector<32x128xf32>
    %32 = arith.mulf %31, %10 : vector<32x128xf32>
    %33 = math.exp %32 : vector<32x128xf32>
    %34 = arith.mulf %29, %33 : vector<32x128xf32>
    %cst_15 = arith.constant 1.000000e+00 : f32
    %35 = vector.broadcast %cst_15 : f32 to vector<32x128xf32>
    %36 = arith.subf %35, %34 : vector<32x128xf32>
    %cst_16 = arith.constant 0.000000e+00 : f32
    %37 = vector.broadcast %cst_16 : f32 to vector<32x128xf32>
    %38 = arith.cmpf olt, %9, %37 : vector<32x128xf32>
    %cst_17 = arith.constant 0.000000e+00 : f32
    %39 = vector.broadcast %cst_17 : f32 to vector<32x128xf32>
    %40 = arith.subf %39, %36 : vector<32x128xf32>
    %41 = arith.select %38, %40, %36 : vector<32x128xi1>, vector<32x128xf32>
    %cst_18 = arith.constant 1.000000e+00 : f32
    %42 = vector.broadcast %cst_18 : f32 to vector<32x128xf32>
    %43 = arith.addf %42, %41 : vector<32x128xf32>
    %44 = arith.mulf %7, %43 : vector<32x128xf32>
    %c0_19 = arith.constant 0 : index
    %c0_20 = arith.constant 0 : index
    %45 = vector.load %arg4[%c0_19, %c0_20] : memref<1x128xf32, #tpu.memory_space<vmem>>, vector<1x128xf32>
    %46 = vector.broadcast %45 : vector<1x128xf32> to vector<32x128xf32>
    %47 = arith.mulf %44, %46 : vector<32x128xf32>
    %c0_21 = arith.constant 0 : index
    %c0_22 = arith.constant 0 : index
    %48 = vector.load %arg5[%c0_21, %c0_22] : memref<1x128xf32, #tpu.memory_space<vmem>>, vector<1x128xf32>
    %49 = vector.broadcast %48 : vector<1x128xf32> to vector<32x128xf32>
    %50 = arith.addf %47, %49 : vector<32x128xf32>
    %51 = arith.truncf %50 : vector<32x128xf32> to vector<32x128xbf16>
    %c0_23 = arith.constant 0 : index
    %c0_24 = arith.constant 0 : index
    %52 = vector.load %arg6[%c0_23, %c0_24] : memref<32x128xbf16, #tpu.memory_space<vmem>>, vector<32x128xbf16>
    tpu.vector_store %arg6[%c0_23, %c0_24], %51 {strides = array<i32>} : memref<32x128xbf16, #tpu.memory_space<vmem>>, vector<32x128xbf16>,
    return
  }
  func.func @transform_0(%arg0: i32) -> (i32, i32) {
    %c0_i32 = arith.constant 0 : i32
    %c0_i32_0 = arith.constant 0 : i32
    return %arg0, %c0_i32 : i32, i32
  }
  func.func @transform_1(%arg0: i32) -> (i32, i32) {
    %c0_i32 = arith.constant 0 : i32
    %c0_i32_0 = arith.constant 0 : i32
    %c0_i32_1 = arith.constant 0 : i32
    return %c0_i32, %c0_i32_0 : i32, i32
  }
  func.func @transform_2(%arg0: i32) -> (i32, i32) {
    %c0_i32 = arith.constant 0 : i32
    %c0_i32_0 = arith.constant 0 : i32
    %c0_i32_1 = arith.constant 0 : i32
    return %c0_i32, %c0_i32_0 : i32, i32
  }
  func.func @transform_3(%arg0: i32) -> (i32, i32) {
    %c0_i32 = arith.constant 0 : i32
    %c0_i32_0 = arith.constant 0 : i32
    %c0_i32_1 = arith.constant 0 : i32
    return %c0_i32, %c0_i32_0 : i32, i32
  }
  func.func @transform_4(%arg0: i32) -> (i32, i32) {
    %c0_i32 = arith.constant 0 : i32
    %c0_i32_0 = arith.constant 0 : i32
    %c0_i32_1 = arith.constant 0 : i32
    return %c0_i32, %c0_i32_0 : i32, i32
  }
  func.func @transform_5(%arg0: i32) -> (i32, i32) {
    %c0_i32 = arith.constant 0 : i32
    %c0_i32_0 = arith.constant 0 : i32
    return %arg0, %c0_i32 : i32, i32
  }
}

module attributes {stable_mosaic.version = 11 : i64} {
  func.func @kernel(%arg0: i32, %arg1: i32, %arg2: memref<32x128xbf16, #tpu.memory_space<vmem>>, %arg3: memref<9x32x1xf32, #tpu.memory_space<vmem>>, %arg4: memref<1x9x128xf32, #tpu.memory_space<vmem>>, %arg5: memref<1x128x128xbf16, #tpu.memory_space<vmem>>, %arg6: memref<1x8x128xf32, #tpu.memory_space<vmem>>, %arg7: memref<2x4x128xf32, #tpu.memory_space<vmem>>, %arg8: memref<32x128xf32, #tpu.memory_space<vmem>>) attributes {dimension_semantics = [#tpu.dimension_semantics<parallel>, #tpu.dimension_semantics<arbitrary>], iteration_bounds = array<i64: 1, 2>, scalar_prefetch = 0 : i64, scratch_operands = 1 : i64, tpu.core_type = #tpu.core_type<tc>, window_params = [{transform_indices = @transform_0, window_bounds = array<i64: 32, 128>}, {pipeline_mode = #tpu.pipeline_mode<synchronous>, transform_indices = @transform_1, window_bounds = array<i64: 9, 32, 1>}, {transform_indices = @transform_2, window_bounds = array<i64: 1, 9, 128>}, {transform_indices = @transform_3, window_bounds = array<i64: 1, 128, 128>}, {transform_indices = @transform_4, window_bounds = array<i64: 1, 8, 128>}, {transform_indices = @transform_5, window_bounds = array<i64: 2, 4, 128>}]} {
    %c0_i32 = arith.constant 0 : i32
    %0 = arith.cmpi eq, %arg1, %c0_i32 : i32
    %1 = arith.extui %0 : i1 to i32
    %c0_i32_0 = arith.constant 0 : i32
    %2 = arith.cmpi ne, %1, %c0_i32_0 : i32
    scf.if %2 {
      %c0_60 = arith.constant 0 : index
      %c0_61 = arith.constant 0 : index
      %190 = vector.load %arg2[%c0_60, %c0_61] : memref<32x128xbf16, #tpu.memory_space<vmem>>, vector<32x128xbf16>
      %191 = arith.extf %190 : vector<32x128xbf16> to vector<32x128xf32>
      %c0_62 = arith.constant 0 : index
      %c0_63 = arith.constant 0 : index
      %192 = vector.load %arg8[%c0_62, %c0_63] : memref<32x128xf32, #tpu.memory_space<vmem>>, vector<32x128xf32>
      tpu.vector_store %arg8[%c0_62, %c0_63], %191 {strides = array<i32>} : memref<32x128xf32, #tpu.memory_space<vmem>>, vector<32x128xf32>,
    } else {
    }
    %c0 = arith.constant 0 : index
    %c0_1 = arith.constant 0 : index
    %3 = vector.load %arg8[%c0, %c0_1] : memref<32x128xf32, #tpu.memory_space<vmem>>, vector<32x128xf32>
    %c0_2 = arith.constant 0 : index
    %c0_3 = arith.constant 0 : index
    %c0_4 = arith.constant 0 : index
    %4 = vector.load %arg4[%c0_2, %c0_3, %c0_4] : memref<1x9x128xf32, #tpu.memory_space<vmem>>, vector<1x9x128xf32>
    %5 = vector.shape_cast %4 : vector<1x9x128xf32> to vector<9x128xf32>
    %c0_5 = arith.constant 0 : index
    %c0_6 = arith.constant 0 : index
    %c0_7 = arith.constant 0 : index
    %6 = vector.load %arg6[%c0_5, %c0_6, %c0_7] : memref<1x8x128xf32, #tpu.memory_space<vmem>>, vector<1x8x128xf32>
    %7 = vector.shape_cast %6 : vector<1x8x128xf32> to vector<8x128xf32>
    %8 = vector.extract_strided_slice %5 {offsets = [4, 0], sizes = [1, 128], strides = [1, 1]} : vector<9x128xf32> to vector<1x128xf32>
    %9 = vector.broadcast %8 : vector<1x128xf32> to vector<32x128xf32>
    %10 = arith.mulf %3, %9 : vector<32x128xf32>
    %c5_i32 = arith.constant 5 : i32
    %11 = tpu.dynamic_rotate %3 by %c5_i32 dim 0 : vector<32x128xf32>, i32 -> vector<32x128xf32>
    %c0_8 = arith.constant 0 : index
    %c0_9 = arith.constant 0 : index
    %c0_10 = arith.constant 0 : index
    %12 = vector.load %arg3[%c0_8, %c0_9, %c0_10] : memref<9x32x1xf32, #tpu.memory_space<vmem>>, vector<1x32x1xf32>
    %13 = vector.shape_cast %12 : vector<1x32x1xf32> to vector<32x1xf32>
    %14 = vector.broadcast %13 : vector<32x1xf32> to vector<32x128xf32>
    %15 = arith.mulf %11, %14 : vector<32x128xf32>
    %16 = vector.extract_strided_slice %5 {offsets = [0, 0], sizes = [1, 128], strides = [1, 1]} : vector<9x128xf32> to vector<1x128xf32>
    %17 = vector.broadcast %16 : vector<1x128xf32> to vector<32x128xf32>
    %18 = arith.mulf %15, %17 : vector<32x128xf32>
    %19 = arith.addf %10, %18 : vector<32x128xf32>
    %c4_i32 = arith.constant 4 : i32
    %20 = tpu.dynamic_rotate %3 by %c4_i32 dim 0 : vector<32x128xf32>, i32 -> vector<32x128xf32>
    %c1 = arith.constant 1 : index
    %c0_11 = arith.constant 0 : index
    %c0_12 = arith.constant 0 : index
    %21 = vector.load %arg3[%c1, %c0_11, %c0_12] : memref<9x32x1xf32, #tpu.memory_space<vmem>>, vector<1x32x1xf32>
    %22 = vector.shape_cast %21 : vector<1x32x1xf32> to vector<32x1xf32>
    %23 = vector.broadcast %22 : vector<32x1xf32> to vector<32x128xf32>
    %24 = arith.mulf %20, %23 : vector<32x128xf32>
    %25 = vector.extract_strided_slice %5 {offsets = [1, 0], sizes = [1, 128], strides = [1, 1]} : vector<9x128xf32> to vector<1x128xf32>
    %26 = vector.broadcast %25 : vector<1x128xf32> to vector<32x128xf32>
    %27 = arith.mulf %24, %26 : vector<32x128xf32>
    %28 = arith.addf %19, %27 : vector<32x128xf32>
    %c3_i32 = arith.constant 3 : i32
    %29 = tpu.dynamic_rotate %3 by %c3_i32 dim 0 : vector<32x128xf32>, i32 -> vector<32x128xf32>
    %c2 = arith.constant 2 : index
    %c0_13 = arith.constant 0 : index
    %c0_14 = arith.constant 0 : index
    %30 = vector.load %arg3[%c2, %c0_13, %c0_14] : memref<9x32x1xf32, #tpu.memory_space<vmem>>, vector<1x32x1xf32>
    %31 = vector.shape_cast %30 : vector<1x32x1xf32> to vector<32x1xf32>
    %32 = vector.broadcast %31 : vector<32x1xf32> to vector<32x128xf32>
    %33 = arith.mulf %29, %32 : vector<32x128xf32>
    %34 = vector.extract_strided_slice %5 {offsets = [2, 0], sizes = [1, 128], strides = [1, 1]} : vector<9x128xf32> to vector<1x128xf32>
    %35 = vector.broadcast %34 : vector<1x128xf32> to vector<32x128xf32>
    %36 = arith.mulf %33, %35 : vector<32x128xf32>
    %37 = arith.addf %28, %36 : vector<32x128xf32>
    %c1_i32 = arith.constant 1 : i32
    %38 = tpu.dynamic_rotate %3 by %c1_i32 dim 0 : vector<32x128xf32>, i32 -> vector<32x128xf32>
    %c3 = arith.constant 3 : index
    %c0_15 = arith.constant 0 : index
    %c0_16 = arith.constant 0 : index
    %39 = vector.load %arg3[%c3, %c0_15, %c0_16] : memref<9x32x1xf32, #tpu.memory_space<vmem>>, vector<1x32x1xf32>
    %40 = vector.shape_cast %39 : vector<1x32x1xf32> to vector<32x1xf32>
    %41 = vector.broadcast %40 : vector<32x1xf32> to vector<32x128xf32>
    %42 = arith.mulf %38, %41 : vector<32x128xf32>
    %43 = vector.extract_strided_slice %5 {offsets = [3, 0], sizes = [1, 128], strides = [1, 1]} : vector<9x128xf32> to vector<1x128xf32>
    %44 = vector.broadcast %43 : vector<1x128xf32> to vector<32x128xf32>
    %45 = arith.mulf %42, %44 : vector<32x128xf32>
    %46 = arith.addf %37, %45 : vector<32x128xf32>
    %c31_i32 = arith.constant 31 : i32
    %47 = tpu.dynamic_rotate %3 by %c31_i32 dim 0 : vector<32x128xf32>, i32 -> vector<32x128xf32>
    %c5 = arith.constant 5 : index
    %c0_17 = arith.constant 0 : index
    %c0_18 = arith.constant 0 : index
    %48 = vector.load %arg3[%c5, %c0_17, %c0_18] : memref<9x32x1xf32, #tpu.memory_space<vmem>>, vector<1x32x1xf32>
    %49 = vector.shape_cast %48 : vector<1x32x1xf32> to vector<32x1xf32>
    %50 = vector.broadcast %49 : vector<32x1xf32> to vector<32x128xf32>
    %51 = arith.mulf %47, %50 : vector<32x128xf32>
    %52 = vector.extract_strided_slice %5 {offsets = [5, 0], sizes = [1, 128], strides = [1, 1]} : vector<9x128xf32> to vector<1x128xf32>
    %53 = vector.broadcast %52 : vector<1x128xf32> to vector<32x128xf32>
    %54 = arith.mulf %51, %53 : vector<32x128xf32>
    %55 = arith.addf %46, %54 : vector<32x128xf32>
    %c29_i32 = arith.constant 29 : i32
    %56 = tpu.dynamic_rotate %3 by %c29_i32 dim 0 : vector<32x128xf32>, i32 -> vector<32x128xf32>
    %c6 = arith.constant 6 : index
    %c0_19 = arith.constant 0 : index
    %c0_20 = arith.constant 0 : index
    %57 = vector.load %arg3[%c6, %c0_19, %c0_20] : memref<9x32x1xf32, #tpu.memory_space<vmem>>, vector<1x32x1xf32>
    %58 = vector.shape_cast %57 : vector<1x32x1xf32> to vector<32x1xf32>
    %59 = vector.broadcast %58 : vector<32x1xf32> to vector<32x128xf32>
    %60 = arith.mulf %56, %59 : vector<32x128xf32>
    %61 = vector.extract_strided_slice %5 {offsets = [6, 0], sizes = [1, 128], strides = [1, 1]} : vector<9x128xf32> to vector<1x128xf32>
    %62 = vector.broadcast %61 : vector<1x128xf32> to vector<32x128xf32>
    %63 = arith.mulf %60, %62 : vector<32x128xf32>
    %64 = arith.addf %55, %63 : vector<32x128xf32>
    %c28_i32 = arith.constant 28 : i32
    %65 = tpu.dynamic_rotate %3 by %c28_i32 dim 0 : vector<32x128xf32>, i32 -> vector<32x128xf32>
    %c7 = arith.constant 7 : index
    %c0_21 = arith.constant 0 : index
    %c0_22 = arith.constant 0 : index
    %66 = vector.load %arg3[%c7, %c0_21, %c0_22] : memref<9x32x1xf32, #tpu.memory_space<vmem>>, vector<1x32x1xf32>
    %67 = vector.shape_cast %66 : vector<1x32x1xf32> to vector<32x1xf32>
    %68 = vector.broadcast %67 : vector<32x1xf32> to vector<32x128xf32>
    %69 = arith.mulf %65, %68 : vector<32x128xf32>
    %70 = vector.extract_strided_slice %5 {offsets = [7, 0], sizes = [1, 128], strides = [1, 1]} : vector<9x128xf32> to vector<1x128xf32>
    %71 = vector.broadcast %70 : vector<1x128xf32> to vector<32x128xf32>
    %72 = arith.mulf %69, %71 : vector<32x128xf32>
    %73 = arith.addf %64, %72 : vector<32x128xf32>
    %c27_i32 = arith.constant 27 : i32
    %74 = tpu.dynamic_rotate %3 by %c27_i32 dim 0 : vector<32x128xf32>, i32 -> vector<32x128xf32>
    %c8 = arith.constant 8 : index
    %c0_23 = arith.constant 0 : index
    %c0_24 = arith.constant 0 : index
    %75 = vector.load %arg3[%c8, %c0_23, %c0_24] : memref<9x32x1xf32, #tpu.memory_space<vmem>>, vector<1x32x1xf32>
    %76 = vector.shape_cast %75 : vector<1x32x1xf32> to vector<32x1xf32>
    %77 = vector.broadcast %76 : vector<32x1xf32> to vector<32x128xf32>
    %78 = arith.mulf %74, %77 : vector<32x128xf32>
    %79 = vector.extract_strided_slice %5 {offsets = [8, 0], sizes = [1, 128], strides = [1, 1]} : vector<9x128xf32> to vector<1x128xf32>
    %80 = vector.broadcast %79 : vector<1x128xf32> to vector<32x128xf32>
    %81 = arith.mulf %78, %80 : vector<32x128xf32>
    %82 = arith.addf %73, %81 : vector<32x128xf32>
    %83 = vector.extract_strided_slice %7 {offsets = [0, 0], sizes = [1, 128], strides = [1, 1]} : vector<8x128xf32> to vector<1x128xf32>
    %84 = vector.broadcast %83 : vector<1x128xf32> to vector<32x128xf32>
    %85 = arith.addf %82, %84 : vector<32x128xf32>
    %cst = arith.constant 5.000000e-01 : f32
    %86 = vector.broadcast %cst : f32 to vector<32x128xf32>
    %87 = arith.mulf %85, %86 : vector<32x128xf32>
    %cst_25 = arith.constant 0.707106769 : f32
    %88 = vector.broadcast %cst_25 : f32 to vector<32x128xf32>
    %89 = arith.mulf %85, %88 : vector<32x128xf32>
    %90 = math.absf %89 : vector<32x128xf32>
    %cst_26 = arith.constant 0.327591091 : f32
    %91 = vector.broadcast %cst_26 : f32 to vector<32x128xf32>
    %92 = arith.mulf %91, %90 : vector<32x128xf32>
    %cst_27 = arith.constant 1.000000e+00 : f32
    %93 = vector.broadcast %cst_27 : f32 to vector<32x128xf32>
    %94 = arith.addf %93, %92 : vector<32x128xf32>
    %95 = tpu.reciprocal %94 : vector<32x128xf32> -> vector<32x128xf32>
    %cst_28 = arith.constant 1.06140542 : f32
    %96 = vector.broadcast %cst_28 : f32 to vector<32x128xf32>
    %97 = arith.mulf %96, %95 : vector<32x128xf32>
    %cst_29 = arith.constant -1.45315206 : f32
    %98 = vector.broadcast %cst_29 : f32 to vector<32x128xf32>
    %99 = arith.addf %97, %98 : vector<32x128xf32>
    %100 = arith.mulf %99, %95 : vector<32x128xf32>
    %cst_30 = arith.constant 1.42141378 : f32
    %101 = vector.broadcast %cst_30 : f32 to vector<32x128xf32>
    %102 = arith.addf %100, %101 : vector<32x128xf32>
    %103 = arith.mulf %102, %95 : vector<32x128xf32>
    %cst_31 = arith.constant -0.284496725 : f32
    %104 = vector.broadcast %cst_31 : f32 to vector<32x128xf32>
    %105 = arith.addf %103, %104 : vector<32x128xf32>
    %106 = arith.mulf %105, %95 : vector<32x128xf32>
    %cst_32 = arith.constant 0.254829586 : f32
    %107 = vector.broadcast %cst_32 : f32 to vector<32x128xf32>
    %108 = arith.addf %106, %107 : vector<32x128xf32>
    %109 = arith.mulf %108, %95 : vector<32x128xf32>
    %cst_33 = arith.constant 0.000000e+00 : f32
    %110 = vector.broadcast %cst_33 : f32 to vector<32x128xf32>
    %111 = arith.subf %110, %90 : vector<32x128xf32>
    %112 = arith.mulf %111, %90 : vector<32x128xf32>
    %113 = math.exp %112 : vector<32x128xf32>
    %114 = arith.mulf %109, %113 : vector<32x128xf32>
    %cst_34 = arith.constant 1.000000e+00 : f32
    %115 = vector.broadcast %cst_34 : f32 to vector<32x128xf32>
    %116 = arith.subf %115, %114 : vector<32x128xf32>
    %cst_35 = arith.constant 0.000000e+00 : f32
    %117 = vector.broadcast %cst_35 : f32 to vector<32x128xf32>
    %118 = arith.cmpf olt, %89, %117 : vector<32x128xf32>
    %cst_36 = arith.constant 0.000000e+00 : f32
    %119 = vector.broadcast %cst_36 : f32 to vector<32x128xf32>
    %120 = arith.subf %119, %116 : vector<32x128xf32>
    %121 = arith.select %118, %120, %116 : vector<32x128xi1>, vector<32x128xf32>
    %cst_37 = arith.constant 1.000000e+00 : f32
    %122 = vector.broadcast %cst_37 : f32 to vector<32x128xf32>
    %123 = arith.addf %122, %121 : vector<32x128xf32>
    %124 = arith.mulf %87, %123 : vector<32x128xf32>
    %125 = vector.extract_strided_slice %7 {offsets = [1, 0], sizes = [1, 128], strides = [1, 1]} : vector<8x128xf32> to vector<1x128xf32>
    %126 = vector.broadcast %125 : vector<1x128xf32> to vector<32x128xf32>
    %127 = arith.mulf %124, %126 : vector<32x128xf32>
    %128 = vector.extract_strided_slice %7 {offsets = [2, 0], sizes = [1, 128], strides = [1, 1]} : vector<8x128xf32> to vector<1x128xf32>
    %129 = vector.broadcast %128 : vector<1x128xf32> to vector<32x128xf32>
    %130 = arith.addf %127, %129 : vector<32x128xf32>
    %131 = arith.addf %130, %3 : vector<32x128xf32>
    %132 = arith.truncf %131 : vector<32x128xf32> to vector<32x128xbf16>
    %c0_38 = arith.constant 0 : index
    %c0_39 = arith.constant 0 : index
    %c0_40 = arith.constant 0 : index
    %133 = vector.load %arg5[%c0_38, %c0_39, %c0_40] : memref<1x128x128xbf16, #tpu.memory_space<vmem>>, vector<1x128x128xbf16>
    %134 = vector.shape_cast %133 : vector<1x128x128xbf16> to vector<128x128xbf16>
    %cst_41 = arith.constant dense<0.000000e+00> : vector<32x128xf32>
    %135 = tpu.matmul %132, %134, %cst_41 {dimension_numbers = #tpu.dot_dimension_numbers<[1], [0], [0], [1], [0, 0, 1, 1], [], []>} : vector<32x128xbf16>, vector<128x128xbf16>, vector<32x128xf32> -> vector<32x128xf32>
    %136 = vector.extract_strided_slice %7 {offsets = [3, 0], sizes = [1, 128], strides = [1, 1]} : vector<8x128xf32> to vector<1x128xf32>
    %137 = vector.broadcast %136 : vector<1x128xf32> to vector<32x128xf32>
    %138 = arith.addf %135, %137 : vector<32x128xf32>
    %cst_42 = arith.constant 5.000000e-01 : f32
    %139 = vector.broadcast %cst_42 : f32 to vector<32x128xf32>
    %140 = arith.mulf %138, %139 : vector<32x128xf32>
    %cst_43 = arith.constant 0.707106769 : f32
    %141 = vector.broadcast %cst_43 : f32 to vector<32x128xf32>
    %142 = arith.mulf %138, %141 : vector<32x128xf32>
    %143 = math.absf %142 : vector<32x128xf32>
    %cst_44 = arith.constant 0.327591091 : f32
    %144 = vector.broadcast %cst_44 : f32 to vector<32x128xf32>
    %145 = arith.mulf %144, %143 : vector<32x128xf32>
    %cst_45 = arith.constant 1.000000e+00 : f32
    %146 = vector.broadcast %cst_45 : f32 to vector<32x128xf32>
    %147 = arith.addf %146, %145 : vector<32x128xf32>
    %148 = tpu.reciprocal %147 : vector<32x128xf32> -> vector<32x128xf32>
    %cst_46 = arith.constant 1.06140542 : f32
    %149 = vector.broadcast %cst_46 : f32 to vector<32x128xf32>
    %150 = arith.mulf %149, %148 : vector<32x128xf32>
    %cst_47 = arith.constant -1.45315206 : f32
    %151 = vector.broadcast %cst_47 : f32 to vector<32x128xf32>
    %152 = arith.addf %150, %151 : vector<32x128xf32>
    %153 = arith.mulf %152, %148 : vector<32x128xf32>
    %cst_48 = arith.constant 1.42141378 : f32
    %154 = vector.broadcast %cst_48 : f32 to vector<32x128xf32>
    %155 = arith.addf %153, %154 : vector<32x128xf32>
    %156 = arith.mulf %155, %148 : vector<32x128xf32>
    %cst_49 = arith.constant -0.284496725 : f32
    %157 = vector.broadcast %cst_49 : f32 to vector<32x128xf32>
    %158 = arith.addf %156, %157 : vector<32x128xf32>
    %159 = arith.mulf %158, %148 : vector<32x128xf32>
    %cst_50 = arith.constant 0.254829586 : f32
    %160 = vector.broadcast %cst_50 : f32 to vector<32x128xf32>
    %161 = arith.addf %159, %160 : vector<32x128xf32>
    %162 = arith.mulf %161, %148 : vector<32x128xf32>
    %cst_51 = arith.constant 0.000000e+00 : f32
    %163 = vector.broadcast %cst_51 : f32 to vector<32x128xf32>
    %164 = arith.subf %163, %143 : vector<32x128xf32>
    %165 = arith.mulf %164, %143 : vector<32x128xf32>
    %166 = math.exp %165 : vector<32x128xf32>
    %167 = arith.mulf %162, %166 : vector<32x128xf32>
    %cst_52 = arith.constant 1.000000e+00 : f32
    %168 = vector.broadcast %cst_52 : f32 to vector<32x128xf32>
    %169 = arith.subf %168, %167 : vector<32x128xf32>
    %cst_53 = arith.constant 0.000000e+00 : f32
    %170 = vector.broadcast %cst_53 : f32 to vector<32x128xf32>
    %171 = arith.cmpf olt, %142, %170 : vector<32x128xf32>
    %cst_54 = arith.constant 0.000000e+00 : f32
    %172 = vector.broadcast %cst_54 : f32 to vector<32x128xf32>
    %173 = arith.subf %172, %169 : vector<32x128xf32>
    %174 = arith.select %171, %173, %169 : vector<32x128xi1>, vector<32x128xf32>
    %cst_55 = arith.constant 1.000000e+00 : f32
    %175 = vector.broadcast %cst_55 : f32 to vector<32x128xf32>
    %176 = arith.addf %175, %174 : vector<32x128xf32>
    %177 = arith.mulf %140, %176 : vector<32x128xf32>
    %178 = vector.extract_strided_slice %7 {offsets = [4, 0], sizes = [1, 128], strides = [1, 1]} : vector<8x128xf32> to vector<1x128xf32>
    %179 = vector.broadcast %178 : vector<1x128xf32> to vector<32x128xf32>
    %180 = arith.mulf %177, %179 : vector<32x128xf32>
    %181 = vector.extract_strided_slice %7 {offsets = [5, 0], sizes = [1, 128], strides = [1, 1]} : vector<8x128xf32> to vector<1x128xf32>
    %182 = vector.broadcast %181 : vector<1x128xf32> to vector<32x128xf32>
    %183 = arith.addf %180, %182 : vector<32x128xf32>
    %c1_i32_56 = arith.constant 1 : i32
    %184 = arith.cmpi slt, %arg1, %c1_i32_56 : i32
    %185 = arith.extui %184 : i1 to i32
    %c0_i32_57 = arith.constant 0 : i32
    %186 = arith.cmpi ne, %185, %c0_i32_57 : i32
    scf.if %186 {
      %c0_60 = arith.constant 0 : index
      %c0_61 = arith.constant 0 : index
      %190 = vector.load %arg8[%c0_60, %c0_61] : memref<32x128xf32, #tpu.memory_space<vmem>>, vector<32x128xf32>
      tpu.vector_store %arg8[%c0_60, %c0_61], %183 {strides = array<i32>} : memref<32x128xf32, #tpu.memory_space<vmem>>, vector<32x128xf32>,
    } else {
    }
    %c1_i32_58 = arith.constant 1 : i32
    %187 = arith.cmpi eq, %arg1, %c1_i32_58 : i32
    %188 = arith.extui %187 : i1 to i32
    %c0_i32_59 = arith.constant 0 : i32
    %189 = arith.cmpi ne, %188, %c0_i32_59 : i32
    scf.if %189 {
      %190 = vector.shape_cast %183 : vector<32x128xf32> to vector<8x4x128xf32>
      %191 = vector.shape_cast %190 : vector<8x4x128xf32> to vector<16x2x128xf32>
      %cst_60 = arith.constant dense<0xFF800000> : vector<16x128xf32>
      %192 = vector.multi_reduction <maximumf>, %191, %cst_60 [1] : vector<16x2x128xf32> to vector<16x128xf32>
      %193 = vector.shape_cast %192 : vector<16x128xf32> to vector<2x4x2x128xf32>
      %194 = vector.shape_cast %193 : vector<2x4x2x128xf32> to vector<4x2x2x128xf32>
      %cst_61 = arith.constant dense<0xFF800000> : vector<4x2x128xf32>
      %195 = vector.multi_reduction <maximumf>, %194, %cst_61 [1] : vector<4x2x2x128xf32> to vector<4x2x128xf32>
      %196 = vector.shape_cast %195 : vector<4x2x128xf32> to vector<2x4x128xf32>
      %c0_62 = arith.constant 0 : index
      %c0_63 = arith.constant 0 : index
      %c0_64 = arith.constant 0 : index
      %197 = vector.load %arg7[%c0_62, %c0_63, %c0_64] : memref<2x4x128xf32, #tpu.memory_space<vmem>>, vector<2x4x128xf32>
      tpu.vector_store %arg7[%c0_62, %c0_63, %c0_64], %196 {strides = array<i32>} : memref<2x4x128xf32, #tpu.memory_space<vmem>>, vector<2x4x128xf32>,
    } else {
    }
    return
  }
  func.func @transform_0(%arg0: i32, %arg1: i32) -> (i32, i32) {
    %c0_i32 = arith.constant 0 : i32
    %c0_i32_0 = arith.constant 0 : i32
    return %arg0, %c0_i32 : i32, i32
  }
  func.func @transform_1(%arg0: i32, %arg1: i32) -> (i32, i32, i32) {
    %c0_i32 = arith.constant 0 : i32
    %c0_i32_0 = arith.constant 0 : i32
    %c0_i32_1 = arith.constant 0 : i32
    %c0_i32_2 = arith.constant 0 : i32
    return %c0_i32, %c0_i32_0, %c0_i32_1 : i32, i32, i32
  }
  func.func @transform_2(%arg0: i32, %arg1: i32) -> (i32, i32, i32) {
    %c0_i32 = arith.constant 0 : i32
    %c0_i32_0 = arith.constant 0 : i32
    %c0_i32_1 = arith.constant 0 : i32
    return %arg1, %c0_i32, %c0_i32_0 : i32, i32, i32
  }
  func.func @transform_3(%arg0: i32, %arg1: i32) -> (i32, i32, i32) {
    %c0_i32 = arith.constant 0 : i32
    %c0_i32_0 = arith.constant 0 : i32
    %c0_i32_1 = arith.constant 0 : i32
    return %arg1, %c0_i32, %c0_i32_0 : i32, i32, i32
  }
  func.func @transform_4(%arg0: i32, %arg1: i32) -> (i32, i32, i32) {
    %c0_i32 = arith.constant 0 : i32
    %c0_i32_0 = arith.constant 0 : i32
    %c0_i32_1 = arith.constant 0 : i32
    return %arg1, %c0_i32, %c0_i32_0 : i32, i32, i32
  }
  func.func @transform_5(%arg0: i32, %arg1: i32) -> (i32, i32, i32) {
    %c0_i32 = arith.constant 0 : i32
    %c0_i32_0 = arith.constant 0 : i32
    %c0_i32_1 = arith.constant 0 : i32
    return %arg0, %c0_i32, %c0_i32_0 : i32, i32, i32
  }
}

</mosaic_0001>

<bundles_post_ra>
// kernel: convmixer_maxpool_forward.2
= control target key start
LH: loop header
LB: loop body
LE: loop exit
PB: predicated region body
PF: predicated region fallthrough
CT: control target
= control target key end

     0   :  { %vm64_vm0 = vcmask 1043456   ;;  %vm65_vm1 = vcmask 1044480   ;;  %vm57_vm2 = vcmask 203776   ;;  %v331_v1 = vmov 65535   ;;  %s421_s1 = inlined_call_operand.vmem [shape: bf16[25,128], index: 1, kind: input, shape index: {}]   ;;  %s422_s0 = inlined_call_operand.vmem [shape: bf16[32,25], index: 0, kind: input, shape index: {}]   ;;  %s423_s2 = inlined_call_operand.vmem [shape: f32[1,128], index: 2, kind: input, shape index: {}]   ;;  %s424_s3 = inlined_call_operand.vmem [shape: f32[1,128], index: 3, kind: input, shape index: {}]   ;;  %s425_s4 = inlined_call_operand.vmem [shape: f32[1,128], index: 4, kind: input, shape index: {}]   ;;  %s426_s5 = inlined_call_operand.vmem [shape: bf16[32,128], index: 5, kind: output, shape index: {}]  }
   0x1   :  { %v311_v0 = vld [vmem:[%s421_s1] sm:$0xff]   ;;  %v66_v2 = vsel %vm64_vm0, 4294967295, %v331_v1  ;;  %v312_v3 = vld [vmem:[%s421_s1 + $0x8] sm:$0x1f]  }
   0x2   :  { %302 = vmatprep.subr.bf16.mxu0 %v311_v0  ;;  %v67_v4 = vsel %vm65_vm1, %v66_v2, 0  ;;  %v313_v5 = vld [vmem:[%s422_s0] sm:$0xff]   ;;  %v314_v7 = vld [vmem:[%s422_s0 + $0x8] sm:$0xff]  }
   0x3   :  { %303 = vmatpush3.bf16.msra.mxu0 %v311_v0  ;;  %v69_v6 = vand.u32 %v312_v3, %v67_v4  ;;  %306 = vmatprep.mubr.msk.bf16.mxu0 %vm57_vm2, %v313_v5  ;;  %v270_v8 = vld [vmem:[%s423_s2] ss:$0 sm:$0xff] }
   0x5   :  { %304 = vmatprep.subr.bf16.mxu0 %v69_v6 }
   0x7   :  { %305 = vmatpush3.bf16.msra.mxu0 %v69_v6 }
   0xa   :  { %307 = vmatmul.mubr.msk.bf16.vlgmr.msra.gmra.mrb[0].mxu0 %vm57_vm2, %v314_v7 }
  0xdd   :  { %v308_v9 = vpop.f32.mrb[0].mxu0 }
  0xde   :  { %v377_v10 = vadd.f32 %v308_v9, %v270_v8  ;;  %v105_v11 = vpop.f32.mrb[1].mxu0 }
  0xdf   :  { %v379_v12 = vadd.f32 %v270_v8, %v105_v11  ;;  %v309_v13 = vpop.f32.mrb[2].mxu0 }
  0xe0   :  { %v382_v14 = vmul.f32 0.70710677, %v377_v10  ;;  %v384_v15 = vadd.f32 %v309_v13, %v270_v8  ;;  %v108_v16 = vpop.f32.mrb[3].mxu0 }
  0xe1   :  { %v387_v17 = vmul.f32 0.70710677, %v379_v12  ;;  %v389_v18 = vadd.f32 %v270_v8, %v108_v16 }
  0xe2   :  { %v130_v19 = vand.u32 2147483647, %v382_v14  ;;  %v393_v20 = vmul.f32 0.70710677, %v384_v15  ;;  %vm206_vm3 = vcmp.lt.f32.partialorder %v382_v14, 0.0 }
  0xe3   :  { %v128_v21 = vand.u32 2147483647, %v387_v17  ;;  %v397_v22 = vmul.f32 0.70710677, %v389_v18  ;;  %vm204_vm4 = vcmp.lt.f32.partialorder %v387_v17, 0.0 }
  0xe4   :  { %v134_v23 = vmul.f32 0.3275911, %v130_v19  ;;  %v131_v24 = vand.u32 2147483647, %v393_v20  ;;  %v182_v33 = vsub.f32 0.0, %v130_v19  ;;  %vm207_vm5 = vcmp.lt.f32.partialorder %v393_v20, 0.0 }
  0xe5   :  { %v132_v25 = vmul.f32 0.3275911, %v128_v21  ;;  %v129_v26 = vand.u32 2147483647, %v397_v22  ;;  %v180_v34 = vsub.f32 0.0, %v128_v21  ;;  %vm205_vm6 = vcmp.lt.f32.partialorder %v397_v22, 0.0 }
  0xe6   :  { %v138_v27 = vadd.f32 1.0, %v134_v23  ;;  %v135_v28 = vmul.f32 0.3275911, %v131_v24  ;;  %v186_v36 = vmul.f32 %v182_v33, %v130_v19  ;;  %v183_v37 = vsub.f32 0.0, %v131_v24  ;;  %v277_v14 = vld [vmem:[%s424_s3] ss:$0 sm:$0xff] }
  0xe7   :  { %v136_v29 = vadd.f32 1.0, %v132_v25  ;;  %v133_v30 = vmul.f32 0.3275911, %v129_v26  ;;  %v184_v40 = vmul.f32 %v180_v34, %v128_v21  ;;  %v181_v42 = vsub.f32 0.0, %v129_v26  ;;  %v278_v20 = vld [vmem:[%s425_s4] ss:$0 sm:$0xff] }
  0xe8   :  { %315 = vrcp.f32 %v138_v27  ;;  %v139_v31 = vadd.f32 1.0, %v135_v28  ;;  %v192_v45 = vmul.f32 1.442695, %v186_v36  ;;  %v187_v47 = vmul.f32 %v183_v37, %v131_v24 }
  0xe9   :  { %317 = vrcp.f32 %v136_v29  ;;  %v137_v32 = vadd.f32 1.0, %v133_v30  ;;  %v188_v49 = vmul.f32 1.442695, %v184_v40  ;;  %v185_v53 = vmul.f32 %v181_v42, %v129_v26 }
  0xea   :  { %319 = vrcp.f32 %v139_v31  ;;  %v194_v58 = vmul.f32 1.442695, %v187_v47 }
  0xeb   :  { %321 = vrcp.f32 %v137_v32  ;;  %v190_v63 = vmul.f32 1.442695, %v185_v53  ;;  %v123_v53 = vmul.f32 0.5, %v384_v15 }
  0xec   :  { %323 = vpow2.f32 %v192_v45 }
  0xed   :  { %325 = vpow2.f32 %v188_v49 }
  0xee   :  { %327 = vpow2.f32 %v194_v58 }
  0xef   :  { %329 = vpow2.f32 %v190_v63 }
  0xf2   :  { %v316_v35 = vpop.eup %315 }
  0xf3   :  { %v318_v38 = vpop.eup %317  ;;  %v146_v39 = vmul.f32 1.0614054, %v316_v35 }
  0xf4   :  { %v144_v41 = vmul.f32 1.0614054, %v318_v38  ;;  %v320_v44 = vpop.eup %319 }
  0xf5   :  { %v150_v43 = vadd.f32 -1.4531521, %v146_v39  ;;  %v147_v50 = vmul.f32 1.0614054, %v320_v44  ;;  %v322_v51 = vpop.eup %321 }
  0xf6   :  { %v148_v46 = vadd.f32 -1.4531521, %v144_v41  ;;  %v145_v56 = vmul.f32 1.0614054, %v322_v51  ;;  %v324_v23 = vpop.eup %323 }
  0xf7   :  { %v154_v48 = vmul.f32 %v316_v35, %v150_v43  ;;  %v151_v55 = vadd.f32 -1.4531521, %v147_v50  ;;  %v326_v25 = vpop.eup %325  ;;  %v122_v43 = vmul.f32 0.5, %v377_v10  ;;  %v120_v50 = vmul.f32 0.5, %v379_v12 }
  0xf8   :  { %v152_v52 = vmul.f32 %v318_v38, %v148_v46  ;;  %v149_v61 = vadd.f32 -1.4531521, %v145_v56  ;;  %v328_v33 = vpop.eup %327 }
  0xf9   :  { %v158_v54 = vadd.f32 1.4214138, %v154_v48  ;;  %v155_v60 = vmul.f32 %v320_v44, %v151_v55  ;;  %v330_v40 = vpop.eup %329 }
  0xfa   :  { %v156_v57 = vadd.f32 1.4214138, %v152_v52  ;;  %v153_v2 = vmul.f32 %v322_v51, %v149_v61 }
  0xfb   :  { %v162_v59 = vmul.f32 %v316_v35, %v158_v54  ;;  %v159_v1 = vadd.f32 1.4214138, %v155_v60 }
  0xfc   :  { %v160_v62 = vmul.f32 %v318_v38, %v156_v57  ;;  %v157_v6 = vadd.f32 1.4214138, %v153_v2  ;;  %v121_v57 = vmul.f32 0.5, %v389_v18 }
  0xfd   :  { %v166_v0 = vadd.f32 -0.28449672, %v162_v59  ;;  %v163_v5 = vmul.f32 %v320_v44, %v159_v1 }
  0xfe   :  { %v164_v3 = vadd.f32 -0.28449672, %v160_v62  ;;  %v161_v11 = vmul.f32 %v322_v51, %v157_v6 }
  0xff   :  { %v170_v4 = vmul.f32 %v316_v35, %v166_v0  ;;  %v167_v9 = vadd.f32 -0.28449672, %v163_v5 }
 0x100   :  { %v168_v7 = vmul.f32 %v318_v38, %v164_v3  ;;  %v165_v21 = vadd.f32 -0.28449672, %v161_v11 }
 0x101   :  { %v174_v8 = vadd.f32 0.2548296, %v170_v4  ;;  %v171_v19 = vmul.f32 %v320_v44, %v167_v9 }
 0x102   :  { %v172_v13 = vadd.f32 0.2548296, %v168_v7  ;;  %v169_v28 = vmul.f32 %v322_v51, %v165_v21 }
 0x103   :  { %v178_v16 = vmul.f32 %v316_v35, %v174_v8  ;;  %v175_v27 = vadd.f32 0.2548296, %v171_v19 }
 0x104   :  { %v176_v24 = vmul.f32 %v318_v38, %v172_v13  ;;  %v173_v32 = vadd.f32 0.2548296, %v169_v28 }
 0x105   :  { %v198_v26 = vmul.f32 %v324_v23, %v178_v16  ;;  %v179_v31 = vmul.f32 %v320_v44, %v175_v27 }
 0x106   :  { %v196_v29 = vmul.f32 %v326_v25, %v176_v24  ;;  %v177_v39 = vmul.f32 %v322_v51, %v173_v32 }
 0x107   :  { %v202_v30 = vsub.f32 1.0, %v198_v26  ;;  %v199_v37 = vmul.f32 %v328_v33, %v179_v31 }
 0x108   :  { %v200_v34 = vsub.f32 1.0, %v196_v29  ;;  %v197_v42 = vmul.f32 %v330_v40, %v177_v39 }
 0x109   :  { %v210_v36 = vsub.f32 0.0, %v202_v30  ;;  %v203_v38 = vsub.f32 1.0, %v199_v37 }
 0x10a   :  { %v208_v35 = vsub.f32 0.0, %v200_v34  ;;  %v201_v48 = vsub.f32 1.0, %v197_v42 }
 0x10b   :  { %v214_v41 = vsel %vm206_vm3, %v210_v36, %v202_v30  ;;  %v211_v47 = vsub.f32 0.0, %v203_v38 }
 0x10c   :  { %v218_v45 = vadd.f32 1.0, %v214_v41  ;;  %v212_v46 = vsel %vm204_vm4, %v208_v35, %v200_v34  ;;  %v209_v17 = vsub.f32 0.0, %v201_v48 }
 0x10d   :  { %v216_v44 = vadd.f32 1.0, %v212_v46  ;;  %v215_v51 = vsel %vm207_vm5, %v211_v47, %v203_v38 }
 0x10e   :  { %v222_v49 = vmul.f32 %v218_v45, %v122_v43  ;;  %v219_v10 = vadd.f32 1.0, %v215_v51  ;;  %v213_v54 = vsel %vm205_vm6, %v209_v17, %v201_v48 }
 0x10f   :  { %v220_v52 = vmul.f32 %v216_v44, %v120_v50  ;;  %v217_v12 = vadd.f32 1.0, %v213_v54 }
 0x110   :  { %v233_v55 = vmul.f32 %v277_v14, %v222_v49  ;;  %v223_v56 = vmul.f32 %v219_v10, %v123_v53 }
 0x111   :  { %v231_v58 = vmul.f32 %v277_v14, %v220_v52  ;;  %v221_v60 = vmul.f32 %v217_v12, %v121_v57 }
 0x112   :  { %v234_v59 = vmul.f32 %v277_v14, %v223_v56  ;;  %v244_v61 = vadd.f32 %v278_v20, %v233_v55 }
 0x113   :  { %v232_v63 = vmul.f32 %v277_v14, %v221_v60  ;;  %v242_v15 = vadd.f32 %v278_v20, %v231_v58 }
 0x114   :  { %v245_v62 = vadd.f32 %v278_v20, %v234_v59 }
 0x115   :  { %v243_v1 = vadd.f32 %v278_v20, %v232_v63 }
 0x116   :  { %v295_v0 = vpack.c.bf16 %v245_v62, %v244_v61 }
 0x117   :  { %v290_v22 = vpack.c.bf16 %v243_v1, %v242_v15 }
 0x118   :  { %297 = vst [vmem:[%s426_s5 + $0x8] sm:$0xff] %v295_v0  }
 0x119   :  { %291 = vst [vmem:[%s426_s5] sm:$0xff] %v290_v22  }

// kernel: convmixer_maxpool_forward.3
= control target key start
LH: loop header
LB: loop body
LE: loop exit
PB: predicated region body
PF: predicated region fallthrough
CT: control target
= control target key end

     0   :  { %10 = vsyncpa [#allocation4], 0  ;;  %s1669_s18 = smov 0   ;;  %s1671_s19 = smov 0   ;;  %s2298_s0 = inlined_call_operand.vmem [shape: bf16[32,128], index: 0, kind: input, shape index: {}]   ;;  %s2299_s1 = inlined_call_operand.vmem [shape: f32[9,32,1], index: 1, kind: input, shape index: {}]   ;;  %s2300_s2 = inlined_call_operand.vmem [shape: f32[2,9,128], index: 2, kind: input, shape index: {}]   ;;  %s2301_s3 = inlined_call_operand.vmem [shape: bf16[2,128,128], index: 3, kind: input, shape index: {}]   ;;  %s2302_s4 = inlined_call_operand.vmem [shape: f32[2,8,128], index: 4, kind: input, shape index: {}]   ;;  %s2303_s5 = inlined_call_operand.hbm [shape: f32[2,4,128], index: 5, kind: output, shape index: {}]  }
   0x1   :  { %s1673_s20 = smov 0  }
   0x2 LB: > { %s1408_s21 = sadd.s32 4294967295, %s1632_s20   ;;  %s25_s22 = sadd.s32 1, %s1628_s19  ;;  %s1632_s20 = sphi %s1673_s20, %s16_s20   ;;  %s1628_s19 = sphi %s1671_s19, %s2340_s19   ;;  %s1624_s18 = sphi %s1669_s18, %s2339_s18  }
   0x3   : > { %p26_p0 = scmp.ge.s32.totalorder %s25_s22, 2  ;;  %p1412_p1 = scmp.ge.s32.totalorder %s1632_s20, 1 }
   0x4   : > { %p230_p2 = scmp.lt.s32.totalorder %s1632_s20, 3 }
   0x5   : > { %s2342_s22 = smov (%p26_p0, %s25_s22), 0 }
   0x6   : > { %p231_p3 = pnand %p1412_p1, %p230_p2 }
   0x8   : > { %234 = sbr.rel (%p231_p3) target bundleno = 623 (0x26f), region = 40 }
   0xf   : > { %p273_p4 = scmp.lt.s32.totalorder %s1624_s18, 1  ;;  %p1418_p5 = scmp.ne.s32.totalorder %s1624_s18, 0 }
  0x10   : > { %v1465_v0 = vld [vmem:[%s2298_s0] sm:$0xff] (!%p1418_p5)   ;;  %v1472_v1 = vld [vmem:[%s2298_s0 + $0x8] sm:$0xff] (!%p1418_p5)  }
  0x11   : > { %s274_s23 = scalar_select %p273_p4, %s1624_s18, 1 }
  0x12   : > { %292 = sbr.rel (%p1418_p5) target bundleno = 25 (0x19), region = 44  ;;  %v1466_v2 = vunpack.c.l.bf16 (!%p1418_p5), %v1465_v0  ;;  %v1467_v3 = vunpack.c.h.bf16 (!%p1418_p5), %v1465_v0  ;;  %v1470_v4 = vunpack.c.l.bf16 (!%p1418_p5), %v1472_v1  ;;  %v1471_v5 = vunpack.c.h.bf16 (!%p1418_p5), %v1472_v1 }
  0x13   : > { %s1462_s24 = sshll.u32 %s274_s23, 4  ;;  %s1463_s25 = sshll.u32 %s274_s23, 6 }
  0x14   : > { %s1695_s28 = scalar_lea.vmem %s2300_s2, %s1462_s24  ;;  %s1700_s6 = scalar_lea.vmem %s2301_s3, %s1463_s25  ;;  %301 = vst [vmem:[#allocation2] sm:$0xff] (!%p1418_p5), %v1466_v2  ;;  %302 = vst [vmem:[#allocation2 + $0x8] sm:$0xff] (!%p1418_p5), %v1467_v3 }
  0x15   : > { %s1417_s7 = sshll.u32 %s274_s23, 3  ;;  %303 = vst [vmem:[#allocation2 + $0x10] sm:$0xff] (!%p1418_p5), %v1470_v4  ;;  %304 = vst [vmem:[#allocation2 + $0x18] sm:$0xff] (!%p1418_p5), %v1471_v5 }
  0x16   : > { %s1705_s10 = scalar_lea.vmem %s2302_s4, %s1417_s7 }
  0x19 PF: > { %v333_v6 = vld [vmem:[%s2299_s1 + $0x10] sm:$0xff]  ;;  %v331_v7 = vld [vmem:[%s2299_s1] sm:$0xff]  ;;  %v1634_v8 = vmov 0   ;;  %v334_v9 = vld [vmem:[%s2299_s1 + $0x18] sm:$0xff]  ;;  %v312_v53 = vlaneseq  ;;  %p1456_p6 = scmp.ge.s32.totalorder %s1624_s18, 1 }
  0x1a   : > { %1539 = vset.pattern.permute.xlu1 %v1634_v8  ;;  %1538 = vset.pattern.permute.xlu0 %v1634_v8  ;;  %v332_v10 = vld [vmem:[%s2299_s1 + $0x8] sm:$0xff]  ;;  %v1419_v12 = vld [vmem:[%s2299_s1 + $0x20] sm:$0xff]  ;;  %v1422_v13 = vld [vmem:[%s2299_s1 + $0x38] sm:$0xff] }
  0x1b   : > { %347 = vperm.xlu1 %1539, %v333_v6   ;;  %337 = vperm.xlu0 %1538, %v331_v7   ;;  %v1420_v11 = vld [vmem:[%s2299_s1 + $0x28] sm:$0xff]  ;;  %v1421_v14 = vld [vmem:[%s2299_s1 + $0x30] sm:$0xff]  ;;  %v1423_v16 = vld [vmem:[%s2299_s1 + $0x40] sm:$0xff]  ;;  %v1834_v56 = vshrl.u32 %v312_v53, 7 }
  0x1c   : > { %v1424_v15 = vld [vmem:[%s2299_s1 + $0x48] sm:$0xff]  ;;  %v1426_v17 = vld [vmem:[%s2299_s1 + $0x58] sm:$0xff]  ;;  %v1425_v18 = vld [vmem:[%s2299_s1 + $0x50] sm:$0xff] }
  0x1d   : > { %v1428_v19 = vld [vmem:[%s2299_s1 + $0x68] sm:$0xff]  ;;  %v1427_v20 = vld [vmem:[%s2299_s1 + $0x60] sm:$0xff]  ;;  %v1430_v21 = vld [vmem:[%s2299_s1 + $0x78] sm:$0xff]  ;;  %v2304_v59 = vsub.s32 4, %v1834_v56  ;;  %v2308_v3 = vsub.s32 0, %v1834_v56  ;;  %v2307_v4 = vsub.s32 1, %v1834_v56 }
  0x1e   : > { %v1429_v22 = vld [vmem:[%s2299_s1 + $0x70] sm:$0xff]  ;;  %v1432_v23 = vld [vmem:[%s2299_s1 + $0xa8] sm:$0xff]  ;;  %v1431_v24 = vld [vmem:[%s2299_s1 + $0xa0] sm:$0xff]  ;;  %vm326_vm0 = vcmp.lt.s32.totalorder %v1834_v56, 5  ;;  %vm375_vm1 = vcmp.lt.s32.totalorder %v1834_v56, 4  ;;  %vm425_vm2 = vcmp.lt.s32.totalorder %v1834_v56, 3 }
  0x1f   : > { %352 = vperm.xlu1 %1539, %v334_v9   ;;  %342 = vperm.xlu0 %1538, %v332_v10   ;;  %v1434_v25 = vld [vmem:[%s2299_s1 + $0xb8] sm:$0xff]  ;;  %v1433_v26 = vld [vmem:[%s2299_s1 + $0xb0] sm:$0xff]  ;;  %v1436_v27 = vld [vmem:[%s2299_s1 + $0xc8] sm:$0xff]  ;;  %vm475_vm3 = vcmp.lt.s32.totalorder %v1834_v56, 1  ;;  %vm525_vm4 = vcmp.lt.s32.totalorder %v1834_v56, 7 }
  0x20   : > { %v1435_v28 = vld [vmem:[%s2299_s1 + $0xc0] sm:$0xff]  ;;  %v1438_v29 = vld [vmem:[%s2299_s1 + $0xd8] sm:$0xff]  ;;  %v1437_v30 = vld [vmem:[%s2299_s1 + $0xd0] sm:$0xff] }
  0x21   : > { %v1440_v31 = vld [vmem:[%s2299_s1 + $0xe8] sm:$0xff]  ;;  %v1439_v32 = vld [vmem:[%s2299_s1 + $0xe0] sm:$0xff]  ;;  %v1442_v33 = vld [vmem:[%s2299_s1 + $0xf8] sm:$0xff] }
  0x22   : > { %v1441_v34 = vld [vmem:[%s2299_s1 + $0xf0] sm:$0xff]  ;;  %v1444_v35 = vld [vmem:[%s2299_s1 + $0x108] sm:$0xff]  ;;  %v1443_v36 = vld [vmem:[%s2299_s1 + $0x100] sm:$0xff] }
  0x23   : > { %392 = vperm.xlu1 %1539, %v1420_v11   ;;  %387 = vperm.xlu0 %1538, %v1419_v12   ;;  %v1446_v37 = vld [vmem:[%s2299_s1 + $0x118] sm:$0xff]  ;;  %v1445_v38 = vld [vmem:[%s2299_s1 + $0x110] sm:$0xff]  ;;  %v1540_v39 = vld [vmem:[%s1700_s6] sm:$0xff]  }
  0x24   : > { %1483 = vmatprep.subr.bf16.mxu0 %v1540_v39  ;;  %v1541_v40 = vld [vmem:[%s1700_s6 + $0x8] sm:$0xff]   ;;  %v1542_v41 = vld [vmem:[%s1700_s6 + $0x10] sm:$0xff]   ;;  %v1543_v42 = vld [vmem:[%s1700_s6 + $0x18] sm:$0xff]  }
  0x25   : > { %1484 = vmatpush3.bf16.msra.mxu0 %v1540_v39  ;;  %v1544_v43 = vld [vmem:[%s1700_s6 + $0x20] sm:$0xff]   ;;  %v1545_v44 = vld [vmem:[%s1700_s6 + $0x28] sm:$0xff]   ;;  %v1546_v45 = vld [vmem:[%s1700_s6 + $0x30] sm:$0xff]  }
  0x26   : > { %1485 = vmatprep.subr.bf16.mxu0 %v1541_v40  ;;  %v1547_v46 = vld [vmem:[%s1700_s6 + $0x38] sm:$0xff]   ;;  %v1841_v60 = vld [vmem:[#allocation2 + $0x8] sm:$0xff]  ;;  %v1843_v61 = vld [vmem:[#allocation2 + $0x10] sm:$0xff] }
  0x27   : > { %402 = vperm.xlu1 %1539, %v1422_v13   ;;  %397 = vperm.xlu0 %1538, %v1421_v14   ;;  %2318 = vst [vmem:[#allocation6_spill] sm:$0xff] %v1841_v60  ;;  %2319 = vst [vmem:[#allocation7_spill] sm:$0xff] %v1843_v61  ;;  %v1846_v62 = vld [vmem:[%s1695_s28] sm:$0xff]  ;;  %v1854_v2 = vld [vmem:[#allocation2 + $0x18] sm:$0xff]  ;;  %v321_v6 = vrot.slane %v1841_v60, 3  ;;  %v322_v7 = vrot.slane %v1843_v61, 3 }
  0x28   : > { %v1852_v1 = vld [vmem:[#allocation2] sm:$0xff]  ;;  %2321 = vst [vmem:[#allocation9_spill] sm:$0xff] %v1854_v2  ;;  %v315_v5 = vrot.slane %v1846_v62, %v2304_v59  ;;  %v323_v9 = vrot.slane %v1854_v2, 3  ;;  %v1874_v12 = vrot.slane %v1846_v62, %v2308_v3  ;;  %v372_v14 = vrot.slane %v1841_v60, 4 }
  0x29   : > { %1486 = vmatpush3.bf16.msra.mxu0 %v1541_v40  ;;  %2320 = vst [vmem:[#allocation8_spill] sm:$0xff] %v1852_v1  ;;  %v320_v8 = vrot.slane %v1852_v1, 3  ;;  %v371_v13 = vrot.slane %v1852_v1, 4  ;;  %v474_v39 = vrot.slane %v1854_v2, 7 }
  0x2a   : > { %1487 = vmatprep.subr.bf16.mxu0 %v1542_v41 }
  0x2b   : > { %442 = vperm.xlu1 %1539, %v1424_v15   ;;  %437 = vperm.xlu0 %1538, %v1423_v16   ;;  %v1881_v15 = vrot.slane %v1846_v62, %v2307_v4  ;;  %v1884_v16 = vmul.f32 %v315_v5, %v1843_v61 }
  0x2d   : > { %1488 = vmatpush3.bf16.msra.mxu0 %v1542_v41 }
  0x2e   : > { %1489 = vmatprep.subr.bf16.mxu0 %v1543_v42 }
  0x2f   : > { %452 = vperm.xlu1 %1539, %v1426_v17   ;;  %447 = vperm.xlu0 %1538, %v1425_v18   ;;  %v1888_v17 = vsel %vm326_vm0, %v321_v6, %v322_v7  ;;  %v1891_v18 = vmul.f32 %v315_v5, %v1852_v1 }
  0x31   : > { %1490 = vmatpush3.bf16.msra.mxu0 %v1543_v42 }
  0x32   : > { %1491 = vmatprep.subr.bf16.mxu0 %v1544_v43 }
  0x33   : > { %492 = vperm.xlu1 %1539, %v1428_v19   ;;  %487 = vperm.xlu0 %1538, %v1427_v20   ;;  %v374_v19 = vrot.slane %v1854_v2, 4  ;;  %v1896_v20 = vsel %vm326_vm0, %v323_v9, %v320_v8 }
  0x35   : > { %1492 = vmatpush3.bf16.msra.mxu0 %v1544_v43 }
  0x36   : > { %1493 = vmatprep.subr.bf16.mxu0 %v1545_v44 }
  0x37   : > { %502 = vperm.xlu1 %1539, %v1430_v21   ;;  %497 = vperm.xlu0 %1538, %v1429_v22   ;;  %v1899_v21 = vmul.f32 %v315_v5, %v1854_v2  ;;  %v1903_v22 = vsel %vm326_vm0, %v322_v7, %v323_v9  ;;  %v521_v9 = vrot.slane %v1852_v1, 1 }
  0x39   : > { %1494 = vmatpush3.bf16.msra.mxu0 %v1545_v44 }
  0x3a   : > { %1495 = vmatprep.subr.bf16.mxu0 %v1546_v45 }
  0x3b   : > { %542 = vperm.xlu1 %1539, %v1432_v23   ;;  %537 = vperm.xlu0 %1538, %v1431_v24   ;;  %v373_v23 = vrot.slane %v1843_v61, 4 }
  0x3d   : > { %1496 = vmatpush3.bf16.msra.mxu0 %v1546_v45  ;;  %v1946_v42 = vsel %vm375_vm1, %v372_v14, %v373_v23  ;;  %v473_v45 = vrot.slane %v1843_v61, 7 }
  0x3e   : > { %1497 = vmatprep.subr.bf16.mxu0 %v1547_v46 }
  0x3f   : > { %552 = vperm.xlu1 %1539, %v1434_v25   ;;  %547 = vperm.xlu0 %1538, %v1433_v26   ;;  %v1911_v26 = vmul.f32 %v315_v5, %v1841_v60  ;;  %v522_v5 = vrot.slane %v1841_v60, 1  ;;  %v476_v59 = vsel %vm475_vm3, %v473_v45, %v474_v39 }
  0x41   : > { %1498 = vmatpush3.bf16.msra.mxu0 %v1547_v46  ;;  %v528_v3 = vsel %vm525_vm4, %v521_v9, %v522_v5 }
  0x43   : > { %583 = vperm.xlu1 %1539, %v1436_v27   ;;  %578 = vperm.xlu0 %1538, %v1435_v28   ;;  %v421_v27 = vrot.slane %v1852_v1, 5  ;;  %v422_v28 = vrot.slane %v1841_v60, 5 }
  0x45   : > { %v1950_v43 = vsel %vm425_vm2, %v421_v27, %v422_v28 }
  0x47   : > { %593 = vperm.xlu1 %1539, %v1438_v29   ;;  %588 = vperm.xlu0 %1538, %v1437_v30   ;;  %v2306_v29 = vsub.s32 2, %v1834_v56  ;;  %v1918_v30 = vsel %vm326_vm0, %v320_v8, %v321_v6  ;;  %v523_v6 = vrot.slane %v1843_v61, 1 }
  0x49   : > { %v1955_v44 = vrot.slane %v1846_v62, %v2306_v29 }
  0x4b   : > { %624 = vperm.xlu1 %1539, %v1440_v31   ;;  %619 = vperm.xlu0 %1538, %v1439_v32   ;;  %v424_v31 = vrot.slane %v1854_v2, 5  ;;  %v423_v32 = vrot.slane %v1843_v61, 5 }
  0x4d   : > { %v1960_v46 = vsel %vm425_vm2, %v424_v31, %v421_v27  ;;  %v1964_v53 = vsel %vm425_vm2, %v423_v32, %v424_v31  ;;  %v1970_v7 = vsel %vm425_vm2, %v422_v28, %v423_v32  ;;  %v524_v27 = vrot.slane %v1854_v2, 1 }
  0x4f   : > { %634 = vperm.xlu1 %1539, %v1442_v33   ;;  %629 = vperm.xlu0 %1538, %v1441_v34   ;;  %v1925_v33 = vsel %vm375_vm1, %v371_v13, %v372_v14  ;;  %v1929_v34 = vsel %vm375_vm1, %v374_v19, %v371_v13 }
  0x50   : > { %2322 = vst [vmem:[#allocation10_spill] sm:$0xff] %v1929_v34 }
  0x53   : > { %665 = vperm.xlu1 %1539, %v1444_v35   ;;  %660 = vperm.xlu0 %1538, %v1443_v36   ;;  %v471_v35 = vrot.slane %v1852_v1, 7  ;;  %v472_v36 = vrot.slane %v1841_v60, 7 }
  0x55   : > { %v478_v8 = vsel %vm475_vm3, %v471_v35, %v472_v36  ;;  %v479_v14 = vsel %vm475_vm3, %v474_v39, %v471_v35  ;;  %v602_v35 = vsub.s32 6, %v1834_v56  ;;  %v477_v4 = vsel %vm475_vm3, %v472_v36, %v473_v45  ;;  %v2016_v45 = vld [vmem:[%s1705_s10] sm:$0xff] }
  0x56   : > { %2324 = vst [vmem:[#allocation12_spill] sm:$0xff] %v2016_v45 }
  0x57   : > { %675 = vperm.xlu1 %1539, %v1446_v37   ;;  %670 = vperm.xlu0 %1538, %v1445_v38   ;;  %v1935_v37 = vsel %vm375_vm1, %v373_v23, %v374_v19  ;;  %v2305_v38 = vsub.s32 3, %v1834_v56  ;;  %v2313_v19 = vsub.s32 5, %v1834_v56 }
  0x58   : > { %2323 = vst [vmem:[#allocation11_spill] sm:$0xff] %v1935_v37 }
  0x59   : > { %v1979_v13 = vrot.slane %v1846_v62, %v2305_v38 }
  0x9a   : > { %v1818_v47 = vpop.permute.xlu1 %347  ;;  %v1820_v48 = vpop.permute.xlu0 %337 }
  0x9b   : > { %v355_v31 = vmul.f32 %v1820_v48, %v1896_v20  ;;  %v357_v38 = vmul.f32 %v1818_v47, %v1888_v17  ;;  %v527_v48 = vsel %vm525_vm4, %v522_v5, %v523_v6  ;;  %v643_v47 = vsub.s32 7, %v1834_v56 }
  0x9d   : > { %v363_v2 = vmul.f32 %v1874_v12, %v355_v31  ;;  %v365_v60 = vmul.f32 %v1874_v12, %v357_v38 }
  0x9e   : > { %v1822_v49 = vpop.permute.xlu1 %352  ;;  %v1824_v50 = vpop.permute.xlu0 %342 }
  0x9f   : > { %v356_v32 = vmul.f32 %v1824_v50, %v1918_v30  ;;  %v358_v29 = vmul.f32 %v1822_v49, %v1903_v22 }
  0xa1   : > { %v364_v1 = vmul.f32 %v1874_v12, %v356_v32 }
  0xa2   : > { %v1826_v51 = vpop.permute.xlu1 %392  ;;  %v1828_v52 = vpop.permute.xlu0 %387 }
  0xa3   : > { %v406_v50 = vmul.f32 %v1826_v51, %v1925_v33  ;;  %v405_v39 = vmul.f32 %v1828_v52, %v1929_v34  ;;  %v2021_v51 = vrot.slane %v1846_v62, %v2313_v19  ;;  %v529_v52 = vsel %vm525_vm4, %v524_v27, %v521_v9 }
  0xa4   : > { %v366_v19 = vmul.f32 %v1874_v12, %v358_v29  ;;  %v2041_v34 = vrot.slane %v1846_v62, %v643_v47 }
  0xa5   : > { %v414_v31 = vmul.f32 %v1881_v15, %v406_v50  ;;  %v413_v32 = vmul.f32 %v1881_v15, %v405_v39  ;;  %v368_v50 = vadd.f32 %v364_v1, %v1911_v26 }
  0xa6   : > { %v1830_v54 = vpop.permute.xlu1 %402  ;;  %v1832_v55 = vpop.permute.xlu0 %397 }
  0xa7   : > { %v408_v49 = vmul.f32 %v1830_v54, %v1935_v37  ;;  %v407_v36 = vmul.f32 %v1832_v55, %v1946_v42  ;;  %v526_v54 = vsel %vm525_vm4, %v523_v6, %v524_v27  ;;  %v2030_v55 = vrot.slane %v1846_v62, %v602_v35 }
  0xa8   : > { %v2325_v6 = vsub.s32 0, %v1834_v56  ;;  %v367_v62 = vadd.f32 %v363_v2, %v1891_v18 }
  0xa9   : > { %v416_v12 = vmul.f32 %v1881_v15, %v408_v49  ;;  %v415_v29 = vmul.f32 %v1881_v15, %v407_v36  ;;  %v369_v49 = vadd.f32 %v365_v60, %v1884_v16  ;;  %v370_v15 = vadd.f32 %v366_v19, %v1899_v21 }
  0xaa   : > { %v1836_v57 = vpop.permute.xlu1 %442  ;;  %v1838_v58 = vpop.permute.xlu0 %437  ;;  %v2046_v27 = vrot.slane %v2016_v45, %v2325_v6  ;;  %v418_v6 = vadd.f32 %v414_v31, %v368_v50  ;;  %v2327_v50 = vld [vmem:[#allocation11_spill] sm:$0xff] }
  0xab   : > { %v456_v37 = vmul.f32 %v1836_v57, %v1950_v43  ;;  %v455_v9 = vmul.f32 %v1838_v58, %v1960_v46  ;;  %v420_v18 = vadd.f32 %v416_v12, %v370_v15  ;;  %v419_v1 = vadd.f32 %v415_v29, %v369_v49 }
  0xad   : > { %v464_v36 = vmul.f32 %v1955_v44, %v456_v37 }
  0xae   : > { %v1848_v63 = vpop.permute.xlu1 %452  ;;  %v1850_v0 = vpop.permute.xlu0 %447 }
  0xaf   : > { %v458_v57 = vmul.f32 %v1848_v63, %v1964_v53  ;;  %v457_v58 = vmul.f32 %v1850_v0, %v1970_v7  ;;  %v463_v63 = vmul.f32 %v1955_v44, %v455_v9  ;;  %v417_v0 = vadd.f32 %v413_v32, %v367_v62 }
  0xb2   : > { %v1866_v10 = vpop.permute.xlu1 %492  ;;  %v1868_v11 = vpop.permute.xlu0 %487 }
  0xb3   : > { %v506_v39 = vmul.f32 %v1866_v10, %v478_v8  ;;  %v505_v47 = vmul.f32 %v1868_v11, %v479_v14  ;;  %v466_v10 = vmul.f32 %v1955_v44, %v458_v57  ;;  %v465_v11 = vmul.f32 %v1955_v44, %v457_v58  ;;  %v2326_v58 = vld [vmem:[#allocation10_spill] sm:$0xff] }
  0xb4   : > { %v468_v14 = vadd.f32 %v464_v36, %v418_v6 }
  0xb5   : > { %v514_v16 = vmul.f32 %v1979_v13, %v506_v39  ;;  %v513_v21 = vmul.f32 %v1979_v13, %v505_v47  ;;  %v470_v31 = vadd.f32 %v466_v10, %v420_v18  ;;  %v469_v32 = vadd.f32 %v465_v11, %v419_v1 }
  0xb6   : > { %v1906_v24 = vpop.permute.xlu1 %502  ;;  %v1908_v25 = vpop.permute.xlu0 %497 }
  0xb7   : > { %v518_v12 = vadd.f32 %v514_v16, %v468_v14 }
  0xba   : > { %v1940_v40 = vpop.permute.xlu1 %542  ;;  %v1942_v41 = vpop.permute.xlu0 %537 }
  0xbb   : > { %v556_v45 = vmul.f32 %v1940_v40, %v527_v48  ;;  %v555_v2 = vmul.f32 %v1942_v41, %v528_v3  ;;  %v467_v40 = vadd.f32 %v463_v63, %v417_v0  ;;  %v508_v3 = vmul.f32 %v1906_v24, %v476_v59 }
  0xbc   : > { %v507_v41 = vmul.f32 %v1908_v25, %v477_v4 }
  0xbd   : > { %v564_v19 = vmul.f32 %v2021_v51, %v556_v45  ;;  %v563_v44 = vmul.f32 %v2021_v51, %v555_v2  ;;  %v517_v59 = vadd.f32 %v513_v21, %v467_v40  ;;  %v516_v25 = vmul.f32 %v1979_v13, %v508_v3 }
  0xbe   : > { %v1984_v23 = vpop.permute.xlu1 %552  ;;  %v1987_v28 = vpop.permute.xlu0 %547 }
  0xbf   : > { %v520_v15 = vadd.f32 %v516_v25, %v470_v31 }
  0xc2   : > { %v584_v61 = vpop.permute.xlu1 %583  ;;  %v579_v5 = vpop.permute.xlu0 %578 }
  0xc3   : > { %v597_v37 = vmul.f32 %v584_v61, %v1888_v17  ;;  %v596_v8 = vmul.f32 %v579_v5, %v1918_v30  ;;  %v558_v61 = vmul.f32 %v1984_v23, %v529_v52  ;;  %v557_v17 = vmul.f32 %v1987_v28, %v526_v54 }
  0xc4   : > { %v568_v23 = vadd.f32 %v564_v19, %v518_v12  ;;  %v567_v52 = vadd.f32 %v563_v44, %v517_v59 }
  0xc5   : > { %v605_v4 = vmul.f32 %v2030_v55, %v597_v37  ;;  %v604_v24 = vmul.f32 %v2030_v55, %v596_v8  ;;  %v566_v29 = vmul.f32 %v2021_v51, %v558_v61  ;;  %v565_v57 = vmul.f32 %v2021_v51, %v557_v17 }
  0xc6   : > { %v594_v38 = vpop.permute.xlu1 %593  ;;  %v589_v35 = vpop.permute.xlu0 %588 }
  0xc7   : > { %v598_v45 = vmul.f32 %v589_v35, %v1903_v22  ;;  %v570_v1 = vadd.f32 %v566_v29, %v520_v15 }
  0xc9   : > { %v606_v6 = vmul.f32 %v2030_v55, %v598_v45 }
  0xca   : > { %v625_v26 = vpop.permute.xlu1 %624  ;;  %v620_v60 = vpop.permute.xlu0 %619 }
  0xcb   : > { %v638_v48 = vmul.f32 %v625_v26, %v1946_v42  ;;  %v637_v9 = vmul.f32 %v620_v60, %v1925_v33  ;;  %v515_v42 = vmul.f32 %v1979_v13, %v507_v41  ;;  %v599_v33 = vmul.f32 %v594_v38, %v1896_v20  ;;  %v1447_v13 = vld [vmem:[%s1695_s28 + $0x8] ss:$0 sm:$0xff] }
  0xcc   : > { %v609_v20 = vadd.f32 %v605_v4, %v568_v23  ;;  %v608_v38 = vadd.f32 %v604_v24, %v567_v52 }
  0xcd   : > { %v646_v28 = vmul.f32 %v2041_v34, %v638_v48  ;;  %v645_v54 = vmul.f32 %v2041_v34, %v637_v9  ;;  %v519_v36 = vadd.f32 %v515_v42, %v469_v32  ;;  %v607_v63 = vmul.f32 %v2030_v55, %v599_v33 }
  0xce   : > { %v635_v30 = vpop.permute.xlu1 %634  ;;  %v630_v5 = vpop.permute.xlu0 %629 }
  0xcf   : > { %v640_v62 = vmul.f32 %v635_v30, %v2326_v58  ;;  %v639_v39 = vmul.f32 %v630_v5, %v2327_v50  ;;  %v650_v51 = vadd.f32 %v646_v28, %v609_v20  ;;  %v649_v0 = vadd.f32 %v645_v54, %v608_v38 }
  0xd0   : > { %v569_v10 = vadd.f32 %v565_v57, %v519_v36  ;;  %v611_v8 = vadd.f32 %v607_v63, %v570_v1 }
  0xd1   : > { %v648_v11 = vmul.f32 %v2041_v34, %v640_v62  ;;  %v647_v26 = vmul.f32 %v2041_v34, %v639_v39 }
  0xd2   : > { %v666_v47 = vpop.permute.xlu1 %665  ;;  %v661_v49 = vpop.permute.xlu0 %660  ;;  %v610_v55 = vadd.f32 %v606_v6, %v569_v10 }
  0xd3   : > { %v679_v22 = vmul.f32 %v666_v47, %v1970_v7  ;;  %v678_v35 = vmul.f32 %v661_v49, %v1950_v43  ;;  %v652_v19 = vadd.f32 %v648_v11, %v611_v8 }
  0xd4   : > { %v651_v34 = vadd.f32 %v647_v26, %v610_v55 }
  0xd5   : > { %v687_v2 = vmul.f32 %v1447_v13, %v679_v22  ;;  %v686_v18 = vmul.f32 %v1447_v13, %v678_v35 }
  0xd6   : > { %v676_v60 = vpop.permute.xlu1 %675  ;;  %v671_v7 = vpop.permute.xlu0 %670 }
  0xd7   : > { %v691_v16 = vadd.f32 %v687_v2, %v650_v51  ;;  %v690_v43 = vadd.f32 %v686_v18, %v649_v0  ;;  %v681_v21 = vmul.f32 %v676_v60, %v1960_v46  ;;  %v680_v37 = vmul.f32 %v671_v7, %v1964_v53 }
  0xd9   : > { %v2100_v14 = vadd.f32 %v2046_v27, %v691_v16  ;;  %v2103_v40 = vadd.f32 %v2046_v27, %v690_v43  ;;  %v689_v3 = vmul.f32 %v1447_v13, %v681_v21  ;;  %v688_v41 = vmul.f32 %v1447_v13, %v680_v37 }
  0xdb   : > { %v2106_v44 = vmul.f32 0.70710677, %v2100_v14  ;;  %v2109_v48 = vmul.f32 0.70710677, %v2103_v40  ;;  %v693_v46 = vadd.f32 %v689_v3, %v652_v19  ;;  %v692_v53 = vadd.f32 %v688_v41, %v651_v34 }
  0xdd   : > { %v711_v9 = vand.u32 2147483647, %v2106_v44  ;;  %v710_v31 = vand.u32 2147483647, %v2109_v48  ;;  %v2114_v32 = vadd.f32 %v2046_v27, %v693_v46  ;;  %v2117_v61 = vadd.f32 %v2046_v27, %v692_v53 }
  0xde   : > { %vm787_vm5 = vcmp.lt.f32.partialorder %v2106_v44, 0.0  ;;  %vm786_vm6 = vcmp.lt.f32.partialorder %v2109_v48, 0.0 }
  0xdf   : > { %v715_v17 = vmul.f32 0.3275911, %v711_v9  ;;  %v714_v30 = vmul.f32 0.3275911, %v710_v31  ;;  %v2120_v5 = vmul.f32 0.70710677, %v2114_v32 }
  0xe0   : > { %v2123_v12 = vmul.f32 0.70710677, %v2117_v61  ;;  %v763_v23 = vsub.f32 0.0, %v711_v9  ;;  %v762_v52 = vsub.f32 0.0, %v710_v31 }
  0xe1   : > { %v719_v59 = vadd.f32 1.0, %v715_v17  ;;  %v718_v4 = vadd.f32 1.0, %v714_v30  ;;  %v713_v24 = vand.u32 2147483647, %v2120_v5  ;;  %vm789_vm7 = vcmp.lt.f32.partialorder %v2120_v5, 0.0 }
  0xe2   : > { %v712_v25 = vand.u32 2147483647, %v2123_v12  ;;  %v767_v54 = vmul.f32 %v763_v23, %v711_v9  ;;  %v766_v57 = vmul.f32 %v762_v52, %v710_v31  ;;  %vm788_vm8 = vcmp.lt.f32.partialorder %v2123_v12, 0.0 }
  0xe3   : > { %1548 = vrcp.f32 %v719_v59  ;;  %v717_v42 = vmul.f32 0.3275911, %v713_v24  ;;  %v765_v58 = vsub.f32 0.0, %v713_v24 }
  0xe4   : > { %1550 = vrcp.f32 %v718_v4  ;;  %v716_v33 = vmul.f32 0.3275911, %v712_v25  ;;  %v764_v50 = vsub.f32 0.0, %v712_v25  ;;  %v772_v13 = vmul.f32 1.442695, %v767_v54 }
  0xe5   : > { %v721_v27 = vadd.f32 1.0, %v717_v42  ;;  %v770_v38 = vmul.f32 1.442695, %v766_v57  ;;  %v769_v22 = vmul.f32 %v765_v58, %v713_v24 }
  0xe6   : > { %v720_v45 = vadd.f32 1.0, %v716_v33  ;;  %v768_v63 = vmul.f32 %v764_v50, %v712_v25 }
  0xe7   : > { %1552 = vrcp.f32 %v721_v27  ;;  %v776_v1 = vmul.f32 1.442695, %v769_v22 }
  0xe8   : > { %1554 = vrcp.f32 %v720_v45  ;;  %v774_v60 = vmul.f32 1.442695, %v768_v63 }
  0xe9   : > { %1556 = vpow2.f32 %v772_v13  ;;  %v2329_v13 = vld [vmem:[#allocation12_spill] sm:$0xff] }
  0xea   : > { %1558 = vpow2.f32 %v770_v38  ;;  %v703_v38 = vmul.f32 0.5, %v2100_v14 }
  0xeb   : > { %1560 = vpow2.f32 %v776_v1  ;;  %v705_v1 = vmul.f32 0.5, %v2114_v32  ;;  %v2333_v32 = vld [vmem:[#allocation9_spill] sm:$0xff] }
  0xec   : > { %1562 = vpow2.f32 %v774_v60 }
  0xed   : > { %v1549_v28 = vpop.eup %1548 }
  0xee   : > { %v1551_v29 = vpop.eup %1550  ;;  %v727_v62 = vmul.f32 1.0614054, %v1549_v28 }
  0xef   : > { %v726_v39 = vmul.f32 1.0614054, %v1551_v29 }
  0xf0   : > { %v731_v47 = vadd.f32 -1.4531521, %v727_v62 }
  0xf1   : > { %v730_v49 = vadd.f32 -1.4531521, %v726_v39  ;;  %v1553_v20 = vpop.eup %1552 }
  0xf2   : > { %v735_v35 = vmul.f32 %v1549_v28, %v731_v47  ;;  %v1555_v15 = vpop.eup %1554  ;;  %v729_v36 = vmul.f32 1.0614054, %v1553_v20  ;;  %v2328_v47 = vsub.s32 1, %v1834_v56 }
  0xf3   : > { %v734_v6 = vmul.f32 %v1551_v29, %v730_v49  ;;  %v728_v51 = vmul.f32 1.0614054, %v1555_v15  ;;  %v1557_v17 = vpop.eup %1556 }
  0xf4   : > { %v739_v0 = vadd.f32 1.4214138, %v735_v35  ;;  %v733_v2 = vadd.f32 -1.4531521, %v729_v36  ;;  %v1559_v4 = vpop.eup %1558  ;;  %v809_v49 = vrot.slane %v2329_v13, %v2328_v47 }
  0xf5   : > { %v738_v18 = vadd.f32 1.4214138, %v734_v6  ;;  %v732_v10 = vadd.f32 -1.4531521, %v728_v51  ;;  %v1561_v54 = vpop.eup %1560  ;;  %v2330_v51 = vsub.s32 2, %v1834_v56 }
  0xf6   : > { %v743_v11 = vmul.f32 %v1549_v28, %v739_v0  ;;  %v737_v26 = vmul.f32 %v1553_v20, %v733_v2  ;;  %v1563_v62 = vpop.eup %1562 }
  0xf7   : > { %v742_v7 = vmul.f32 %v1551_v29, %v738_v18  ;;  %v736_v16 = vmul.f32 %v1555_v15, %v732_v10  ;;  %v817_v48 = vrot.slane %v2329_v13, %v2330_v51 }
  0xf8   : > { %v747_v43 = vadd.f32 -0.28449672, %v743_v11  ;;  %v741_v21 = vadd.f32 1.4214138, %v737_v26  ;;  %v704_v26 = vmul.f32 0.5, %v2117_v61 }
  0xf9   : > { %v746_v37 = vadd.f32 -0.28449672, %v742_v7  ;;  %v740_v8 = vadd.f32 1.4214138, %v736_v16 }
  0xfa   : > { %v751_v55 = vmul.f32 %v1549_v28, %v747_v43  ;;  %v745_v3 = vmul.f32 %v1553_v20, %v741_v21 }
  0xfb   : > { %v750_v41 = vmul.f32 %v1551_v29, %v746_v37  ;;  %v744_v19 = vmul.f32 %v1555_v15, %v740_v8  ;;  %v2331_v37 = vld [vmem:[#allocation6_spill] sm:$0xff]  ;;  %v2332_v8 = vld [vmem:[#allocation8_spill] sm:$0xff] }
  0xfc   : > { %v755_v34 = vadd.f32 0.2548296, %v751_v55  ;;  %v749_v46 = vadd.f32 -0.28449672, %v745_v3 }
  0xfd   : > { %v754_v53 = vadd.f32 0.2548296, %v750_v41  ;;  %v748_v9 = vadd.f32 -0.28449672, %v744_v19 }
  0xfe   : > { %v759_v31 = vmul.f32 %v1549_v28, %v755_v34  ;;  %v753_v30 = vmul.f32 %v1553_v20, %v749_v46 }
  0xff   : > { %v758_v59 = vmul.f32 %v1551_v29, %v754_v53  ;;  %v752_v24 = vmul.f32 %v1555_v15, %v748_v9  ;;  %v2334_v53 = vld [vmem:[#allocation7_spill] sm:$0xff] }
 0x100   : > { %v779_v25 = vmul.f32 %v1557_v17, %v759_v31  ;;  %v757_v42 = vadd.f32 0.2548296, %v753_v30  ;;  %v2335_v31 = vsub.s32 3, %v1834_v56 }
 0x101   : > { %v778_v33 = vmul.f32 %v1559_v4, %v758_v59  ;;  %v756_v27 = vadd.f32 0.2548296, %v752_v24 }
 0x102   : > { %v783_v45 = vsub.f32 1.0, %v779_v25  ;;  %v761_v23 = vmul.f32 %v1553_v20, %v757_v42  ;;  %v847_v17 = vrot.slane %v2329_v13, %v2335_v31 }
 0x103   : > { %v782_v52 = vsub.f32 1.0, %v778_v33  ;;  %v760_v57 = vmul.f32 %v1555_v15, %v756_v27  ;;  %v702_v15 = vmul.f32 0.5, %v2103_v40 }
 0x104   : > { %v791_v58 = vsub.f32 0.0, %v783_v45  ;;  %v781_v50 = vmul.f32 %v1561_v54, %v761_v23 }
 0x105   : > { %v790_v28 = vsub.f32 0.0, %v782_v52  ;;  %v780_v29 = vmul.f32 %v1563_v62, %v760_v57 }
 0x106   : > { %v795_v39 = vsel %vm787_vm5, %v791_v58, %v783_v45  ;;  %v785_v20 = vsub.f32 1.0, %v781_v50 }
 0x107   : > { %v794_v22 = vsel %vm786_vm6, %v790_v28, %v782_v52  ;;  %v799_v35 = vadd.f32 1.0, %v795_v39  ;;  %v784_v36 = vsub.f32 1.0, %v780_v29 }
 0x108   : > { %v798_v63 = vadd.f32 1.0, %v794_v22  ;;  %v793_v44 = vsub.f32 0.0, %v785_v20 }
 0x109   : > { %v803_v6 = vmul.f32 %v799_v35, %v703_v38  ;;  %v792_v0 = vsub.f32 0.0, %v784_v36 }
 0x10a   : > { %v802_v2 = vmul.f32 %v798_v63, %v702_v15  ;;  %v797_v18 = vsel %vm789_vm7, %v793_v44, %v785_v20 }
 0x10b   : > { %v811_v14 = vmul.f32 %v809_v49, %v803_v6  ;;  %v801_v10 = vadd.f32 1.0, %v797_v18  ;;  %v796_v40 = vsel %vm788_vm8, %v792_v0, %v784_v36 }
 0x10c   : > { %v810_v11 = vmul.f32 %v809_v49, %v802_v2  ;;  %v800_v60 = vadd.f32 1.0, %v796_v40 }
 0x10d   : > { %v819_v7 = vadd.f32 %v817_v48, %v811_v14  ;;  %v805_v16 = vmul.f32 %v801_v10, %v705_v1 }
 0x10e   : > { %v818_v43 = vadd.f32 %v817_v48, %v810_v11  ;;  %v804_v21 = vmul.f32 %v800_v60, %v704_v26 }
 0x10f   : > { %v823_v5 = vadd.f32 %v819_v7, %v2331_v37  ;;  %v813_v3 = vmul.f32 %v809_v49, %v805_v16 }
 0x110   : > { %v822_v55 = vadd.f32 %v818_v43, %v2332_v8  ;;  %v812_v41 = vmul.f32 %v809_v49, %v804_v21 }
 0x111   : > { %v821_v19 = vadd.f32 %v817_v48, %v813_v3 }
 0x112   : > { %v826_v12 = vpack.c.bf16 %v823_v5, %v822_v55  ;;  %v820_v34 = vadd.f32 %v817_v48, %v812_v41 }
 0x113   : > { %v825_v46 = vadd.f32 %v821_v19, %v2333_v32 }
 0x114   : > { %1499 = vmatprep.mubr.bf16.mxu0 %v826_v12  ;;  %v824_v9 = vadd.f32 %v820_v34, %v2334_v53 }
 0x116   : > { %v827_v61 = vpack.c.bf16 %v825_v46, %v824_v9 }
 0x118   : > { %1500 = vmatmul.mubr.bf16.vlgmr.msra.gmra.mrb[0].mxu0 %v827_v61 }
 0x1eb   : > { %v1501_v30 = vpop.f32.mrb[0].mxu0 }
 0x1ec   : > { %v2148_v59 = vadd.f32 %v1501_v30, %v847_v17  ;;  %v930_v4 = vpop.f32.mrb[1].mxu0 }
 0x1ed   : > { %v2150_v24 = vadd.f32 %v930_v4, %v847_v17  ;;  %v1502_v25 = vpop.f32.mrb[2].mxu0 }
 0x1ee   : > { %v2153_v42 = vmul.f32 0.70710677, %v2148_v59  ;;  %v2155_v33 = vadd.f32 %v1502_v25, %v847_v17  ;;  %v933_v27 = vpop.f32.mrb[3].mxu0 }
 0x1ef   : > { %v2158_v45 = vmul.f32 0.70710677, %v2150_v24  ;;  %v2160_v23 = vadd.f32 %v933_v27, %v847_v17 }
 0x1f0   : > { %v955_v52 = vand.u32 2147483647, %v2153_v42  ;;  %v2164_v54 = vmul.f32 0.70710677, %v2155_v33  ;;  %vm1031_vm9 = vcmp.lt.f32.partialorder %v2153_v42, 0.0  ;;  %v2337_v42 = vsub.s32 5, %v1834_v56 }
 0x1f1   : > { %v953_v57 = vand.u32 2147483647, %v2158_v45  ;;  %v2168_v58 = vmul.f32 0.70710677, %v2160_v23  ;;  %vm1029_vm10 = vcmp.lt.f32.partialorder %v2158_v45, 0.0 }
 0x1f2   : > { %v959_v62 = vmul.f32 0.3275911, %v955_v52  ;;  %v956_v50 = vand.u32 2147483647, %v2164_v54  ;;  %v1007_v35 = vsub.f32 0.0, %v955_v52  ;;  %vm1032_vm11 = vcmp.lt.f32.partialorder %v2164_v54, 0.0 }
 0x1f3   : > { %v957_v28 = vmul.f32 0.3275911, %v953_v57  ;;  %v954_v29 = vand.u32 2147483647, %v2168_v58  ;;  %v1005_v15 = vsub.f32 0.0, %v953_v57  ;;  %vm1030_vm12 = vcmp.lt.f32.partialorder %v2168_v58, 0.0 }
 0x1f4   : > { %v963_v39 = vadd.f32 1.0, %v959_v62  ;;  %v960_v47 = vmul.f32 0.3275911, %v956_v50  ;;  %v1011_v63 = vmul.f32 %v1007_v35, %v955_v52  ;;  %v1008_v44 = vsub.f32 0.0, %v956_v50 }
 0x1f5   : > { %v961_v49 = vadd.f32 1.0, %v957_v28  ;;  %v958_v38 = vmul.f32 0.3275911, %v954_v29  ;;  %v1009_v48 = vmul.f32 %v1005_v15, %v953_v57  ;;  %v1006_v2 = vsub.f32 0.0, %v954_v29 }
 0x1f6   : > { %1564 = vrcp.f32 %v963_v39  ;;  %v964_v20 = vadd.f32 1.0, %v960_v47  ;;  %v1017_v1 = vmul.f32 1.442695, %v1011_v63  ;;  %v1012_v40 = vmul.f32 %v1008_v44, %v956_v50 }
 0x1f7   : > { %1566 = vrcp.f32 %v961_v49  ;;  %v962_v22 = vadd.f32 1.0, %v958_v38  ;;  %v1013_v26 = vmul.f32 1.442695, %v1009_v48  ;;  %v1010_v43 = vmul.f32 %v1006_v2, %v954_v29 }
 0x1f8   : > { %1568 = vrcp.f32 %v964_v20  ;;  %v1019_v55 = vmul.f32 1.442695, %v1012_v40 }
 0x1f9   : > { %1570 = vrcp.f32 %v962_v22  ;;  %v1015_v34 = vmul.f32 1.442695, %v1010_v43 }
 0x1fa   : > { %1572 = vpow2.f32 %v1017_v1 }
 0x1fb   : > { %1574 = vpow2.f32 %v1013_v26 }
 0x1fc   : > { %1576 = vpow2.f32 %v1019_v55  ;;  %v948_v55 = vmul.f32 0.5, %v2155_v33 }
 0x1fd   : > { %1578 = vpow2.f32 %v1015_v34  ;;  %v946_v34 = vmul.f32 0.5, %v2160_v23 }
 0x200   : > { %v1565_v36 = vpop.eup %1564 }
 0x201   : > { %v1567_v6 = vpop.eup %1566  ;;  %v971_v51 = vmul.f32 1.0614054, %v1565_v36 }
 0x202   : > { %v969_v0 = vmul.f32 1.0614054, %v1567_v6  ;;  %v1569_v14 = vpop.eup %1568 }
 0x203   : > { %v975_v18 = vadd.f32 -1.4531521, %v971_v51  ;;  %v972_v60 = vmul.f32 1.0614054, %v1569_v14  ;;  %v1571_v7 = vpop.eup %1570 }
 0x204   : > { %v973_v10 = vadd.f32 -1.4531521, %v969_v0  ;;  %v970_v5 = vmul.f32 1.0614054, %v1571_v7  ;;  %v1573_v28 = vpop.eup %1572 }
 0x205   : > { %v979_v11 = vmul.f32 %v1565_v36, %v975_v18  ;;  %v976_v37 = vadd.f32 -1.4531521, %v972_v60  ;;  %v1575_v39 = vpop.eup %1574  ;;  %v945_v60 = vmul.f32 0.5, %v2150_v24 }
 0x206   : > { %v977_v16 = vmul.f32 %v1567_v6, %v973_v10  ;;  %v974_v12 = vadd.f32 -1.4531521, %v970_v5  ;;  %v1577_v63 = vpop.eup %1576  ;;  %v947_v10 = vmul.f32 0.5, %v2148_v59 }
 0x207   : > { %v983_v21 = vadd.f32 1.4214138, %v979_v11  ;;  %v980_v41 = vmul.f32 %v1569_v14, %v976_v37  ;;  %v1579_v2 = vpop.eup %1578 }
 0x208   : > { %v981_v8 = vadd.f32 1.4214138, %v977_v16  ;;  %v978_v53 = vmul.f32 %v1571_v7, %v974_v12 }
 0x209   : > { %v987_v3 = vmul.f32 %v1565_v36, %v983_v21  ;;  %v984_v46 = vadd.f32 1.4214138, %v980_v41  ;;  %v1060_v21 = vrot.slane %v2329_v13, %v2337_v42 }
 0x20a   : > { %v985_v19 = vmul.f32 %v1567_v6, %v981_v8  ;;  %v982_v17 = vadd.f32 1.4214138, %v978_v53 }
 0x20b   : > { %v991_v32 = vadd.f32 -0.28449672, %v987_v3  ;;  %v988_v31 = vmul.f32 %v1569_v14, %v984_v46 }
 0x20c   : > { %v989_v9 = vadd.f32 -0.28449672, %v985_v19  ;;  %v986_v27 = vmul.f32 %v1571_v7, %v982_v17 }
 0x20d   : > { %v995_v61 = vmul.f32 %v1565_v36, %v991_v32  ;;  %v992_v25 = vadd.f32 -0.28449672, %v988_v31 }
 0x20e   : > { %v993_v30 = vmul.f32 %v1567_v6, %v989_v9  ;;  %v990_v50 = vadd.f32 -0.28449672, %v986_v27 }
 0x20f   : > { %v999_v4 = vadd.f32 0.2548296, %v995_v61  ;;  %v996_v62 = vmul.f32 %v1569_v14, %v992_v25 }
 0x210   : > { %v997_v52 = vadd.f32 0.2548296, %v993_v30  ;;  %v994_v38 = vmul.f32 %v1571_v7, %v990_v50 }
 0x211   : > { %v1003_v57 = vmul.f32 %v1565_v36, %v999_v4  ;;  %v1000_v49 = vadd.f32 0.2548296, %v996_v62 }
 0x212   : > { %v1001_v29 = vmul.f32 %v1567_v6, %v997_v52  ;;  %v998_v15 = vadd.f32 0.2548296, %v994_v38 }
 0x213   : > { %v1023_v47 = vmul.f32 %v1573_v28, %v1003_v57  ;;  %v1004_v35 = vmul.f32 %v1569_v14, %v1000_v49  ;;  %v2336_v14 = vsub.s32 4, %v1834_v56 }
 0x214   : > { %v1021_v20 = vmul.f32 %v1575_v39, %v1001_v29  ;;  %v1002_v0 = vmul.f32 %v1571_v7, %v998_v15 }
 0x215   : > { %v1027_v22 = vsub.f32 1.0, %v1023_v47  ;;  %v1024_v48 = vmul.f32 %v1577_v63, %v1004_v35  ;;  %v1052_v11 = vrot.slane %v2329_v13, %v2336_v14 }
 0x216   : > { %v1025_v44 = vsub.f32 1.0, %v1021_v20  ;;  %v1022_v1 = vmul.f32 %v1579_v2, %v1002_v0 }
 0x217   : > { %v1035_v51 = vsub.f32 0.0, %v1027_v22  ;;  %v1028_v6 = vsub.f32 1.0, %v1024_v48 }
 0x218   : > { %v1033_v36 = vsub.f32 0.0, %v1025_v44  ;;  %v1026_v43 = vsub.f32 1.0, %v1022_v1 }
 0x219   : > { %v1039_v18 = vsel %vm1031_vm9, %v1035_v51, %v1027_v22  ;;  %v1036_v16 = vsub.f32 0.0, %v1028_v6 }
 0x21a   : > { %v1043_v40 = vadd.f32 1.0, %v1039_v18  ;;  %v1037_v26 = vsel %vm1029_vm10, %v1033_v36, %v1025_v44  ;;  %v1034_v5 = vsub.f32 0.0, %v1026_v43 }
 0x21b   : > { %v1041_v7 = vadd.f32 1.0, %v1037_v26  ;;  %v1040_v59 = vsel %vm1032_vm11, %v1036_v16, %v1028_v6 }
 0x21c   : > { %v1047_v45 = vmul.f32 %v1043_v40, %v947_v10  ;;  %v1044_v3 = vadd.f32 1.0, %v1040_v59  ;;  %v1038_v41 = vsel %vm1030_vm12, %v1034_v5, %v1026_v43 }
 0x21d   : > { %v1045_v37 = vmul.f32 %v1041_v7, %v945_v60  ;;  %v1042_v32 = vadd.f32 1.0, %v1038_v41  ;;  %1068 = sbr.rel (%p1456_p6) target bundleno = 550 (0x226), region = 48 }
 0x21e   : > { %v1055_v8 = vmul.f32 %v1052_v11, %v1047_v45  ;;  %v1048_v19 = vmul.f32 %v1044_v3, %v948_v55 }
 0x21f   : > { %v1053_v24 = vmul.f32 %v1052_v11, %v1045_v37  ;;  %v1046_v53 = vmul.f32 %v1042_v32, %v946_v34 }
 0x220   : > { %v1063_v12 = vadd.f32 %v1060_v21, %v1055_v8  ;;  %v1056_v46 = vmul.f32 %v1052_v11, %v1048_v19 }
 0x221   : > { %v1061_v13 = vadd.f32 %v1060_v21, %v1053_v24  ;;  %v1054_v9 = vmul.f32 %v1052_v11, %v1046_v53 }
 0x222   : > { %v1064_v54 = vadd.f32 %v1060_v21, %v1056_v46  ;;  %1071 = vst [vmem:[#allocation2 + $0x10] sm:$0xff] (!%p1456_p6), %v1063_v12 }
 0x223   : > { %v1062_v61 = vadd.f32 %v1060_v21, %v1054_v9  ;;  %1069 = vst [vmem:[#allocation2] sm:$0xff] (!%p1456_p6), %v1061_v13 }
 0x224   : > { %1072 = vst [vmem:[#allocation2 + $0x18] sm:$0xff] %v1064_v54 }
 0x225   : > { %1070 = vst [vmem:[#allocation2 + $0x8] sm:$0xff] %v1062_v61 }
 0x226 PF: > { %p1457_p7 = scmp.ne.s32.totalorder %s1624_s18, 1 }
 0x227   : > { %v1635_v33 = vmov (!%p1457_p7), 1983009808   ;;  %v1081_v58 = vcombine.high (!%p1457_p7), %v1061_v13, %v1061_v13  ;;  %v1098_v17 = vcombine.high (!%p1457_p7), %v1062_v61, %v1062_v61  ;;  %v1115_v30 = vcombine.high (!%p1457_p7), %v1063_v12, %v1063_v12 }
 0x228   : > { %1076 = sbr.rel (%p1457_p7) target bundleno = 597 (0x255), region = 52  ;;  %v1083_v23 = vunpack.c.l.s4 (!%p1457_p7), %v1635_v33  ;;  %v1132_v4 = vcombine.high (!%p1457_p7), %v1064_v54, %v1064_v54  ;;  %vm1165_vm13 = vcmask (!%p1457_p7), 1041408   ;;  %vm1294_vm14 = vcmask (!%p1457_p7), 1041409  }
 0x229   : > { %vm1296_vm15 = vcmask (!%p1457_p7), 1042434   ;;  %vm1298_vm0 = vcmask (!%p1457_p7), 1043459  }
 0x22a   : > { %v1084_v31 = vunpack.c.0.s8 (!%p1457_p7), %v1083_v23 }
 0x22c   : > { %v1087_v25 = vsub.s32 (!%p1457_p7), %v1084_v31, %v1834_v56 }
 0x22e   : > { %v1088_v27 = vrot.slane (!%p1457_p7), %v1061_v13, %v1087_v25  ;;  %v1095_v52 = vrot.slane (!%p1457_p7), %v1081_v58, %v1087_v25  ;;  %v1105_v57 = vrot.slane (!%p1457_p7), %v1062_v61, %v1087_v25  ;;  %v1112_v62 = vrot.slane (!%p1457_p7), %v1098_v17, %v1087_v25 }
 0x22f   : > { %v2189_v50 = vrot.slane %v1063_v12, %v1087_v25  ;;  %v2191_v28 = vrot.slane %v1115_v30, %v1087_v25  ;;  %v2193_v29 = vrot.slane %v1064_v54, %v1087_v25  ;;  %v2195_v39 = vrot.slane %v1132_v4, %v1087_v25 }
 0x230   : > { %v1096_v47 = vcombine.high %v1088_v27, %v1088_v27  ;;  %v1097_v49 = vcombine.high %v1095_v52, %v1095_v52  ;;  %v1113_v38 = vcombine.high %v1105_v57, %v1105_v57  ;;  %v1114_v20 = vcombine.high %v1112_v62, %v1112_v62 }
 0x231   : > { %v1130_v56 = vcombine.high %v2189_v50, %v2189_v50  ;;  %v1131_v22 = vcombine.high %v2191_v28, %v2191_v28  ;;  %v1147_v35 = vcombine.high %v2193_v29, %v2193_v29  ;;  %v1148_v15 = vcombine.high %v2195_v39, %v2195_v39 }
 0x232   : > { %v1166_v63 = vsel %vm1165_vm13, %v1088_v27, -inf  ;;  %v1173_v44 = vsel %vm1165_vm13, %v1096_v47, -inf  ;;  %v1180_v51 = vsel %vm1165_vm13, %v1095_v52, -inf  ;;  %v1187_v48 = vsel %vm1165_vm13, %v1097_v49, -inf }
 0x233   : > { %v1167_v0 = vrot.slane %v1166_v63, 4  ;;  %v1174_v2 = vrot.slane %v1173_v44, 4  ;;  %v1181_v36 = vrot.slane %v1180_v51, 4  ;;  %v1188_v18 = vrot.slane %v1187_v48, 4 }
 0x234   : > { %v1194_v6 = vsel %vm1165_vm13, %v1105_v57, -inf  ;;  %v1201_v1 = vsel %vm1165_vm13, %v1113_v38, -inf  ;;  %v1208_v10 = vsel %vm1165_vm13, %v1112_v62, -inf  ;;  %v1215_v40 = vsel %vm1165_vm13, %v1114_v20, -inf }
 0x235   : > { %v1168_v14 = vmax.f32 %v1166_v63, %v1167_v0  ;;  %v1175_v11 = vmax.f32 %v1173_v44, %v1174_v2  ;;  %v1182_v26 = vmax.f32 %v1180_v51, %v1181_v36  ;;  %v1189_v60 = vmax.f32 %v1187_v48, %v1188_v18 }
 0x236   : > { %v1195_v7 = vrot.slane %v1194_v6, 4  ;;  %v1202_v16 = vrot.slane %v1201_v1, 4  ;;  %v1209_v43 = vrot.slane %v1208_v10, 4  ;;  %v1216_v42 = vrot.slane %v1215_v40, 4 }
 0x237   : > { %v1169_v21 = vrot.slane %v1168_v14, 2  ;;  %v1176_v45 = vrot.slane %v1175_v11, 2  ;;  %v1183_v37 = vrot.slane %v1182_v26, 2  ;;  %v1190_v59 = vrot.slane %v1189_v60, 2 }
 0x238   : > { %v1196_v5 = vmax.f32 %v1194_v6, %v1195_v7  ;;  %v1203_v8 = vmax.f32 %v1201_v1, %v1202_v16  ;;  %v1210_v55 = vmax.f32 %v1208_v10, %v1209_v43  ;;  %v1217_v3 = vmax.f32 %v1215_v40, %v1216_v42 }
 0x239   : > { %v1170_v24 = vmax.f32 %v1168_v14, %v1169_v21  ;;  %v1177_v41 = vmax.f32 %v1175_v11, %v1176_v45  ;;  %v1184_v12 = vmax.f32 %v1182_v26, %v1183_v37  ;;  %v1191_v19 = vmax.f32 %v1189_v60, %v1190_v59 }
 0x23a   : > { %v1197_v34 = vrot.slane %v1196_v5, 2  ;;  %v1204_v32 = vrot.slane %v1203_v8, 2  ;;  %v1211_v13 = vrot.slane %v1210_v55, 2  ;;  %v1218_v46 = vrot.slane %v1217_v3, 2 }
 0x23b   : > { %v1171_v53 = vrot.slane %v1170_v24, 1  ;;  %v1178_v54 = vrot.slane %v1177_v41, 1  ;;  %v1185_v9 = vrot.slane %v1184_v12, 1  ;;  %v1192_v61 = vrot.slane %v1191_v19, 1 }
 0x23c   : > { %v1198_v33 = vmax.f32 %v1196_v5, %v1197_v34  ;;  %v1205_v23 = vmax.f32 %v1203_v8, %v1204_v32  ;;  %v1212_v58 = vmax.f32 %v1210_v55, %v1211_v13  ;;  %v1219_v31 = vmax.f32 %v1217_v3, %v1218_v46 }
 0x23d   : > { %v2213_v17 = vmax.f32 %v1170_v24, %v1171_v53  ;;  %v2215_v30 = vmax.f32 %v1177_v41, %v1178_v54  ;;  %v2217_v4 = vmax.f32 %v1184_v12, %v1185_v9  ;;  %v2219_v25 = vmax.f32 %v1191_v19, %v1192_v61 }
 0x23e   : > { %v1199_v27 = vrot.slane %v1198_v33, 1  ;;  %v1206_v52 = vrot.slane %v1205_v23, 1  ;;  %v1213_v57 = vrot.slane %v1212_v58, 1  ;;  %v1220_v62 = vrot.slane %v1219_v31, 1 }
 0x23f   : > { %v1222_v47 = vsel %vm1165_vm13, %v2189_v50, -inf  ;;  %v1229_v49 = vsel %vm1165_vm13, %v1130_v56, -inf  ;;  %v1236_v38 = vsel %vm1165_vm13, %v2191_v28, -inf  ;;  %v1243_v20 = vsel %vm1165_vm13, %v1131_v22, -inf }
 0x240   : > { %v2227_v63 = vmax.f32 %v1198_v33, %v1199_v27  ;;  %v2229_v44 = vmax.f32 %v1205_v23, %v1206_v52  ;;  %v2231_v51 = vmax.f32 %v1212_v58, %v1213_v57  ;;  %v2233_v48 = vmax.f32 %v1219_v31, %v1220_v62 }
 0x241   : > { %v1223_v0 = vrot.slane %v1222_v47, 4  ;;  %v1230_v2 = vrot.slane %v1229_v49, 4  ;;  %v1237_v36 = vrot.slane %v1236_v38, 4  ;;  %v1244_v18 = vrot.slane %v1243_v20, 4 }
 0x242   : > { %v1250_v50 = vsel %vm1165_vm13, %v2193_v29, -inf  ;;  %v1257_v28 = vsel %vm1165_vm13, %v1147_v35, -inf  ;;  %v1264_v56 = vsel %vm1165_vm13, %v2195_v39, -inf  ;;  %v1271_v22 = vsel %vm1165_vm13, %v1148_v15, -inf }
 0x243   : > { %v1224_v6 = vmax.f32 %v1222_v47, %v1223_v0  ;;  %v1231_v1 = vmax.f32 %v1229_v49, %v1230_v2  ;;  %v1238_v10 = vmax.f32 %v1236_v38, %v1237_v36  ;;  %v1245_v40 = vmax.f32 %v1243_v20, %v1244_v18 }
 0x244   : > { %v1251_v14 = vrot.slane %v1250_v50, 4  ;;  %v1258_v11 = vrot.slane %v1257_v28, 4  ;;  %v1265_v26 = vrot.slane %v1264_v56, 4  ;;  %v1272_v60 = vrot.slane %v1271_v22, 4 }
 0x245   : > { %v1225_v29 = vrot.slane %v1224_v6, 2  ;;  %v1232_v7 = vrot.slane %v1231_v1, 2  ;;  %v1239_v35 = vrot.slane %v1238_v10, 2  ;;  %v1246_v16 = vrot.slane %v1245_v40, 2 }
 0x246   : > { %v1252_v43 = vmax.f32 %v1250_v50, %v1251_v14  ;;  %v1259_v42 = vmax.f32 %v1257_v28, %v1258_v11  ;;  %v1266_v21 = vmax.f32 %v1264_v56, %v1265_v26  ;;  %v1273_v39 = vmax.f32 %v1271_v22, %v1272_v60 }
 0x247   : > { %v1226_v15 = vmax.f32 %v1224_v6, %v1225_v29  ;;  %v1233_v45 = vmax.f32 %v1231_v1, %v1232_v7  ;;  %v1240_v37 = vmax.f32 %v1238_v10, %v1239_v35  ;;  %v1247_v59 = vmax.f32 %v1245_v40, %v1246_v16 }
 0x248   : > { %v1253_v5 = vrot.slane %v1252_v43, 2  ;;  %v1260_v8 = vrot.slane %v1259_v42, 2  ;;  %v1267_v55 = vrot.slane %v1266_v21, 2  ;;  %v1274_v3 = vrot.slane %v1273_v39, 2 }
 0x249   : > { %v1227_v24 = vrot.slane %v1226_v15, 1  ;;  %v1234_v41 = vrot.slane %v1233_v45, 1  ;;  %v1241_v12 = vrot.slane %v1240_v37, 1  ;;  %v1248_v19 = vrot.slane %v1247_v59, 1 }
 0x24a   : > { %v1254_v34 = vmax.f32 %v1252_v43, %v1253_v5  ;;  %v1261_v32 = vmax.f32 %v1259_v42, %v1260_v8  ;;  %v1268_v13 = vmax.f32 %v1266_v21, %v1267_v55  ;;  %v1275_v46 = vmax.f32 %v1273_v39, %v1274_v3 }
 0x24b   : > { %v1228_v53 = vmax.f32 %v1226_v15, %v1227_v24  ;;  %v1235_v54 = vmax.f32 %v1233_v45, %v1234_v41  ;;  %v1242_v9 = vmax.f32 %v1240_v37, %v1241_v12  ;;  %v1249_v61 = vmax.f32 %v1247_v59, %v1248_v19 }
 0x24c   : > { %v1255_v33 = vrot.slane %v1254_v34, 1  ;;  %v1262_v23 = vrot.slane %v1261_v32, 1  ;;  %v1269_v58 = vrot.slane %v1268_v13, 1  ;;  %v1276_v31 = vrot.slane %v1275_v46, 1 }
 0x24d   : > { %v1278_v27 = vmax.f32 %v2213_v17, %v2217_v4  ;;  %v1279_v52 = vmax.f32 %v2215_v30, %v2219_v25  ;;  %v1280_v57 = vmax.f32 %v2227_v63, %v2231_v51  ;;  %v1281_v62 = vmax.f32 %v2229_v44, %v2233_v48 }
 0x24e   : > { %v1256_v47 = vmax.f32 %v1254_v34, %v1255_v33  ;;  %v1263_v49 = vmax.f32 %v1261_v32, %v1262_v23  ;;  %v1270_v38 = vmax.f32 %v1268_v13, %v1269_v58  ;;  %v1277_v20 = vmax.f32 %v1275_v46, %v1276_v31 }
 0x24f   : > { %v1282_v0 = vmax.f32 %v1228_v53, %v1242_v9  ;;  %v1283_v2 = vmax.f32 %v1235_v54, %v1249_v61  ;;  %v1295_v36 = vsel %vm1294_vm14, %v1279_v52, %v1278_v27 }
 0x250   : > { %v1284_v18 = vmax.f32 %v1256_v47, %v1270_v38  ;;  %v1285_v50 = vmax.f32 %v1263_v49, %v1277_v20  ;;  %v1297_v17 = vsel %vm1296_vm15, %v1280_v57, %v1295_v36 }
 0x251   : > { %v1299_v30 = vsel %vm1298_vm0, %v1281_v62, %v1297_v17  ;;  %v1300_v4 = vsel %vm1294_vm14, %v1283_v2, %v1282_v0 }
 0x252   : > { %v1301_v25 = vsel %vm1296_vm15, %v1284_v18, %v1300_v4  ;;  %1305 = vst [vmem:[#allocation3] sm:$0xf] %v1299_v30 }
 0x253   : > { %v1302_v63 = vsel %vm1298_vm0, %v1285_v50, %v1301_v25 }
 0x254   : > { %1306 = vst [vmem:[#allocation3 + $0x4] sm:$0xf] %v1302_v63 }
 0x255 PF: > { %p2263_p8 = scmp.eq.s32.totalorder %s1408_s21, 1  ;;  %s1636_s28 = smov [#allocation3]  }
 0x256   : > { %s1316_s6 = sshll.u32 %s1636_s28, 4  ;;  %s1317_s6 = int_to_ptr.vmem [resolvable:$true] %s1316_s6 }
 0x257   : > { %s1580_s10 = scalar_lea.vmem %s1317_s6, 128  ;;  %p1587_p12 = scmp.lt.s32.totalorder %s1317_s6, %s1317_s6 }
 0x258   : > { %p1581_p9 = scmp.ne.s32.totalorder %s1317_s6, %s1580_s10  ;;  %p1588_p13 = scmp.lt.s32.totalorder %s1580_s10, %s1580_s10 }
 0x25a   : > { %p1582_p10 = pnand %p1581_p9, %p2263_p8  ;;  %p1589_p0 = por %p1588_p13, %p1587_p12 }
 0x25c   : > { %p1583_p11 = pneg %p1582_p10 }
 0x25e   : > { %p1590_p1 = pnand %p1589_p0, %p1583_p11 }
 0x260   : > { %1593 = shalt.err (!%p1590_p1)
}
 0x261   : > { %s1594_s21 = scalar_lea.hbm %s2303_s5, 128 }
 0x262   : > { %p1595_p2 = scmp.ne.s32.totalorder %s2303_s5, %s1594_s21  ;;  %p1600_p5 = scmp.lt.u32.totalorder %s1594_s21, %s2303_s5 }
 0x264   : > { %p1596_p3 = pnand %p1595_p2, %p2263_p8 }
 0x266   : > { %p1597_p4 = pneg %p1596_p3 }
 0x268   : > { %p1602_p6 = pnand %p1600_p5, %p1597_p4 }
 0x26a   : > { %1605 = shalt.err (!%p1602_p6)
}
 0x26b   : > { %s1637_s17 = smov 64   ;;  %s1638_s23 = smov 4  }
 0x26c   : > { %1504 = dma.vmem_to_hbm [thread:$0]  (%p2263_p8), %s1317_s6, 128, %s2303_s5, [#allocation4], %s1637_s17, %s1637_s17, %s1638_s23  }
 0x26d   : > { %1619 = dma.done.wait (%p2263_p8), [#allocation4], 128  }
 0x26e   : > { %1621 = vsyncadd (%p2263_p8), [#allocation4], 4294967168 }
 0x26f PF: > { %s16_s20 = sadd.s32 1, %s1632_s20   ;;  %s2339_s18 = smov %s1628_s19 }
 0x270   : > { %p13_p7 = scmp.ge.s32.totalorder %s16_s20, 4   ;;  %s2340_s19 = smov %s2342_s22 }
 0x272   :  { %15 = sbr.rel (!%p13_p7) target bundleno = 2 (0x2), region = 96 }
 0x279   :  { %1332 = vsyncpa [#allocation4], 1 }
 0x27a   :  { %1334 = vsyncpa [#allocation4 + $0x1], 1 }

</bundles_post_ra>
